<compile_context>
chip_gen: v7x
topology: tpu7x:2x2x1
jax: 0.10.0
libtpu: 0.0.40
codegen_flags: <defaults>
</compile_context>

<pallas_src>
import numpy as np
import jax
import jax.numpy as jnp
from jax.experimental import pallas as pl
from jax.experimental.pallas import tpu as pltpu

HIDDEN = 128
K = 24
NODE_ALIGN = 128          # node-count padding: lane-dense stores + even grids
FEAT_PAD = 128            # raw 15-feature axis zero-padded to one lane tile
_BIG = 1e30               # cross-graph distance sentinel (stored negated: -_BIG)


def _elu(x):
    # nn.ELU(alpha=1.0).  exp(x)-1 kept (vs expm1) for guaranteed Mosaic lowering.
    return jnp.where(x > 0, x, jnp.exp(x) - 1.0)


def _row_tile(n, pref=256):
    # Largest power-of-two row tile dividing n, capped at n//2 so every 'parallel'
    # grid axis has >= 2 steps (v7x has 2 TensorCores); never below 8 sublanes.
    cap = min(pref, n // 2) if n >= 16 else n
    for t in (256, 128, 64, 32, 16, 8):
        if t <= cap and n % t == 0:
            return t
    return n


def _col_tile(n, pref=512):
    # Neighbor-axis tile (multiple of 128) for the distance matrix; keeps the
    # per-step VMEM footprint bounded at large N (important for v7x's 64 MiB).
    for t in (pref, 256, 128):
        if t <= n and n % t == 0:
            return t
    return n


# --------------------------------------------------------------------------- pf_encode
# Sequential(Linear(15->128), ELU, Linear(128,128), ELU) fused into one kernel.
def _pf_encode_kernel(x_ref, w1_ref, b1_ref, w2_ref, b2_ref, o_ref):
    x16 = x_ref[...].astype(jnp.bfloat16)                      # bf16 MXU inputs
    h = jnp.dot(x16, w1_ref[...], preferred_element_type=jnp.float32) + b1_ref[...]
    h = _elu(h)                                                # ELU kept in f32
    h = jnp.dot(h.astype(jnp.bfloat16), w2_ref[...],
                preferred_element_type=jnp.float32) + b2_ref[...]
    o_ref[...] = _elu(h)


def pf_encode(x, w1_16, b1, w2_16, b2):
    n, f = x.shape
    h = w1_16.shape[1]
    tm = _row_tile(n)
    return pl.pallas_call(
        _pf_encode_kernel,
        out_shape=jax.ShapeDtypeStruct((n, h), jnp.float32),
        grid=(n // tm,),
        in_specs=[
            pl.BlockSpec((tm, f), lambda i: (i, 0)),
            pl.BlockSpec((f, h), lambda i: (0, 0)),
            pl.BlockSpec((1, h), lambda i: (0, 0)),
            pl.BlockSpec((h, h), lambda i: (0, 0)),
            pl.BlockSpec((1, h), lambda i: (0, 0)),
        ],
        out_specs=pl.BlockSpec((tm, h), lambda i: (i, 0)),
        compiler_params=pltpu.CompilerParams(dimension_semantics=("parallel",)),
    )(x, w1_16, b1, w2_16, b2)


# ------------------------------------------------------- fused distances + conv projections
# Grid (query blocks, neighbor blocks).  Per (i, j): negated masked squared-distance
# tile (bf16 Gram on the MXU, f32 accumulation); per (i, 0): one fused 256-wide
# projection producing both c and bn.
def _conv_front_kernel(xq_ref, xn_ref, bq_ref, bn_ids_ref, n2n_ref,
                       w_ref, b_ref, negd_ref, c_ref, bnbr_ref):
    h = xq_ref.shape[1]
    xq = xq_ref[...]                                            # (tm, H) f32
    xq16 = xq.astype(jnp.bfloat16)
    # Gram tile on the MXU: bf16 inputs, f32 accumulation, contracting the feature
    # axis of both operands (trans-B — neighbor block arrives untransposed, bf16).
    g = jax.lax.dot_general(xq16, xn_ref[...], (((1,), (1,)), ((), ())),
                            preferred_element_type=jnp.float32)        # (tm, tn)
    n2q = jnp.sum(xq * xq, axis=1, keepdims=True)               # (tm, 1) f32
    same = bq_ref[...] == bn_ids_ref[...]                       # (tm,1)==(1,tn)
    # Negated squared distance, masked with -_BIG, so lax.top_k consumes it directly.
    negd = 2.0 * g - n2q - n2n_ref[...]
    negd_ref[...] = jnp.where(same, negd, jnp.float32(-_BIG))

    @pl.when(pl.program_id(1) == 0)
    def _():
        # single (tm,128)@(128,256) matmul fills the 256-lane MXU on v6e/v7x.
        proj = jnp.dot(xq16, w_ref[...], preferred_element_type=jnp.float32)
        c_ref[...] = proj[:, :h] + b_ref[...]
        bnbr_ref[...] = proj[:, h:]


def conv_front(x, x16, bcol, brow, n2row, wcat16, b):
    n, h = x.shape
    tm = _row_tile(n)
    tn = _col_tile(n)
    return pl.pallas_call(
        _conv_front_kernel,
        out_shape=(jax.ShapeDtypeStruct((n, n), jnp.float32),
                   jax.ShapeDtypeStruct((n, h), jnp.float32),
                   jax.ShapeDtypeStruct((n, h), jnp.float32)),
        grid=(n // tm, n // tn),
        in_specs=[
            pl.BlockSpec((tm, h), lambda i, j: (i, 0)),     # query rows, f32
            pl.BlockSpec((tn, h), lambda i, j: (j, 0)),     # neighbor rows, bf16
            pl.BlockSpec((tm, 1), lambda i, j: (i, 0)),     # query graph ids
            pl.BlockSpec((1, tn), lambda i, j: (0, j)),     # neighbor graph ids
            pl.BlockSpec((1, tn), lambda i, j: (0, j)),     # neighbor squared norms
            pl.BlockSpec((h, 2 * h), lambda i, j: (0, 0)),  # [W_diff | W_nbr] (bf16)
            pl.BlockSpec((1, h), lambda i, j: (0, 0)),      # bias (f32)
        ],
        out_specs=(pl.BlockSpec((tm, tn), lambda i, j: (i, j)),
                   pl.BlockSpec((tm, h), lambda i, j: (i, 0)),
                   pl.BlockSpec((tm, h), lambda i, j: (i, 0))),
        compiler_params=pltpu.CompilerParams(
            dimension_semantics=("parallel", "arbitrary")),
    )(x, x16, bcol, brow, n2row, wcat16, b)


# ------------------------------------------------------------------- neighbor aggregation
# out_i = ELU(c_i + max_{j in kNN(i)} bn_j); kNN indices arrive via scalar prefetch
# (SMEM) and bn rows are gathered from a VMEM-resident copy.  64-row query blocks
# amortize the per-step pipeline overhead; each row is written directly (no
# concatenate relayout), with the +c and single ELU fused into the store.
def _edge_aggregate_kernel(idx_sref, c_ref, bn_ref, o_ref):
    i = pl.program_id(0)
    tq = o_ref.shape[0]

    @pl.loop(0, tq)
    def _(q):
        base = (i * tq + q) * K
        acc = bn_ref[pl.ds(idx_sref[base], 1), :]          # self is in its own kNN set
        for k in range(1, K):                              # static unroll, K = 24
            acc = jnp.maximum(acc, bn_ref[pl.ds(idx_sref[base + k], 1), :])
        o_ref[pl.ds(q, 1), :] = _elu(c_ref[pl.ds(q, 1), :] + acc)


def edge_aggregate(idx_flat, c, bn):
    n, h = c.shape
    tq = _row_tile(n, pref=128)          # 64-128 query rows per grid step
    # TODO(synk): for N >~ 10k, pass idx as a blocked SMEM input
    # (pl.BlockSpec((tq*K,), lambda i: (i,), memory_space=SMEM)) instead of whole-array
    # scalar prefetch, and single-buffer / tile the resident bn copy (v7x 64 MiB VMEM).
    return pl.pallas_call(
        _edge_aggregate_kernel,
        out_shape=jax.ShapeDtypeStruct((n, h), jnp.float32),
        grid_spec=pltpu.PrefetchScalarGridSpec(
            num_scalar_prefetch=1,
            grid=(n // tq,),
            in_specs=[pl.BlockSpec((tq, h), lambda i, idx: (i, 0)),   # c block
                      pl.BlockSpec((n, h), lambda i, idx: (0, 0))],   # bn (resident)
            out_specs=pl.BlockSpec((tq, h), lambda i, idx: (i, 0)),
        ),
        compiler_params=pltpu.CompilerParams(dimension_semantics=("parallel",)),
    )(idx_flat, c, bn)


# --------------------------------------------------------- fused global_add_pool + MLP head
# scatter-add by graph id as a one-hot matmul, then
# Sequential(Linear(128,64), ELU, Linear(64,32), ELU, Linear(32,32), ELU, Linear(32,8)),
# all in one kernel so the pooled (G,128) never touches HBM.
def _pool_head_kernel(x_ref, brow_ref, w1_ref, b1_ref, w2_ref, b2_ref,
                      w3_ref, b3_ref, w4_ref, b4_ref, o_ref):
    g = o_ref.shape[0]
    n = x_ref.shape[0]
    gid = jax.lax.broadcasted_iota(jnp.int32, (g, n), 0)
    onehot = (gid == brow_ref[...]).astype(jnp.float32)        # padded rows match nothing
    pooled = jnp.dot(onehot, x_ref[...], preferred_element_type=jnp.float32)
    h = _elu(jnp.dot(pooled, w1_ref[...], preferred_element_type=jnp.float32) + b1_ref[...])
    h = _elu(jnp.dot(h, w2_ref[...], preferred_element_type=jnp.float32) + b2_ref[...])
    h = _elu(jnp.dot(h, w3_ref[...], preferred_element_type=jnp.float32) + b3_ref[...])
    o_ref[...] = jnp.dot(h, w4_ref[...], preferred_element_type=jnp.float32) + b4_ref[...]


def pool_head(x, brow, params, num_graphs):
    # TODO(synk): for very large N (v7x 64 MiB VMEM) tile the node axis with an
    # 'arbitrary' accumulation grid axis instead of keeping feats fully resident.
    args = (x, brow,
            params["out_w1"], params["out_b1"], params["out_w2"], params["out_b2"],
            params["out_w3"], params["out_b3"], params["out_w4"], params["out_b4"])
    return pl.pallas_call(
        _pool_head_kernel,
        out_shape=jax.ShapeDtypeStruct((num_graphs, 8), jnp.float32),
        grid=(1,),
        in_specs=[pl.BlockSpec(a.shape, lambda i: (0, 0)) for a in args],
        out_specs=pl.BlockSpec((num_graphs, 8), lambda i: (0, 0)),
    )(*args)


# ------------------------------------------------------------------------------ forward
def net_forward(x_pf, batch_pf, params, num_graphs):
    n_raw, f = x_pf.shape
    n = ((n_raw + NODE_ALIGN - 1) // NODE_ALIGN) * NODE_ALIGN   # pad nodes to 128 multiple
    pad_n = n - n_raw
    x_pf_p = jnp.pad(x_pf.astype(jnp.float32), ((0, pad_n), (0, FEAT_PAD - f)))
    batch_ids = jnp.pad(batch_pf.astype(jnp.int32), (0, pad_n),
                        constant_values=num_graphs)             # sentinel id: inert rows
    bcol = batch_ids[:, None]                   # (n, 1) int32
    brow = batch_ids[None, :]                   # (1, n) int32

    # One-time weight prep: bf16 MXU inputs (biases + accumulation stay f32),
    # fused [W_diff | W_nbr] for the 256-wide projection, encoder W1 zero-padded
    # to the 128-wide feature axis.
    wcat16 = jnp.concatenate([params["conv_wdiff"], params["conv_wnbr"]],
                             axis=1).astype(jnp.bfloat16)       # (128, 256)
    pf_w1_16 = jnp.pad(params["pf_w1"], ((0, FEAT_PAD - f), (0, 0))).astype(jnp.bfloat16)
    pf_w2_16 = params["pf_w2"].astype(jnp.bfloat16)

    feats = pf_encode(x_pf_p, pf_w1_16, params["pf_b1"], pf_w2_16, params["pf_b2"])
    # TODO(synk): graphs with fewer than K=24 real nodes would pick cross-graph
    # sentinel neighbors (PyTorch knn caps k at the per-graph node count).
    for _ in range(3):                          # the same self.conv applied three times
        feats16 = feats.astype(jnp.bfloat16)                    # bf16 Gram operand
        n2row = jnp.sum(feats * feats, axis=1)[None, :]         # (1, n) f32
        negd, c, bn = conv_front(feats, feats16, bcol, brow, n2row, wcat16,
                                 params["conv_b"])
        # TODO(synk): top-k selection stays in XLA (no clean Pallas TPU top-k primitive);
        # at large N move a running k=24 selection into conv_front to turn the O(N^2)
        # HBM round-trip into O(N*K).
        _, idx = jax.lax.top_k(negd, K)          # consumes -d directly (no negation pass)
        feats = edge_aggregate(idx.reshape(-1), c, bn)
    out = pool_head(feats, brow, params, num_graphs)
    return out, batch_pf


# ------------------------------------------------------------------------------ parameters
def _init_linear(key, fan_in, fan_out):
    kw, kb = jax.random.split(key)
    bound = 1.0 / float(np.sqrt(fan_in))                  # PyTorch nn.Linear default init
    w = jax.random.uniform(kw, (fan_in, fan_out), jnp.float32, -bound, bound)
    b = jax.random.uniform(kb, (1, fan_out), jnp.float32, -bound, bound)
    return w, b


def init_params(key):
    keys = jax.random.split(key, 7)
    pf_w1, pf_b1 = _init_linear(keys[0], 15, HIDDEN)
    pf_w2, pf_b2 = _init_linear(keys[1], HIDDEN, HIDDEN)
    conv_w, conv_b = _init_linear(keys[2], 2 * HIDDEN, HIDDEN)   # nn.Linear(2*128, 128)
    out_w1, out_b1 = _init_linear(keys[3], HIDDEN, 64)
    out_w2, out_b2 = _init_linear(keys[4], 64, 32)
    out_w3, out_b3 = _init_linear(keys[5], 32, 32)
    out_w4, out_b4 = _init_linear(keys[6], 32, 8)
    # edge MLP on concat([x_i, x_j - x_i]) decomposes into two HxH matmuls:
    conv_wdiff = conv_w[:HIDDEN, :] - conv_w[HIDDEN:, :]  # acts on x_i
    conv_wnbr = conv_w[HIDDEN:, :]                        # acts on x_j
    return dict(pf_w1=pf_w1, pf_b1=pf_b1, pf_w2=pf_w2, pf_b2=pf_b2,
                conv_wdiff=conv_wdiff, conv_wnbr=conv_wnbr, conv_b=conv_b,
                out_w1=out_w1, out_b1=out_b1, out_w2=out_w2, out_b2=out_b2,
                out_w3=out_w3, out_b3=out_b3, out_w4=out_w4, out_b4=out_b4)


if __name__ == "__main__":
    key = jax.random.PRNGKey(0)
    k_param, k_x = jax.random.split(key)

    num_graphs = 2
    nodes_per_graph = 32                     # must be >= K=24 so every graph has k neighbors
    n_nodes = num_graphs * nodes_per_graph

    params = init_params(k_param)
    x_pf = jax.random.normal(k_x, (n_nodes, 15), jnp.float32)
    batch_pf = jnp.repeat(jnp.arange(num_graphs, dtype=jnp.int32), nodes_per_graph)

    fwd = jax.jit(net_forward, static_argnums=(3,))
    out, batch = fwd(x_pf, batch_pf, params, num_graphs)
    out = jax.block_until_ready(out)

    assert out.shape == (num_graphs, 8)
    assert batch.shape == (n_nodes,)
    assert bool(jnp.all(jnp.isfinite(out)))
    print("KERNEL_OK")
</pallas_src>

<mosaic_0001>
module attributes {stable_mosaic.version = 11 : i64} {
  func.func @_pf_encode_kernel(%arg0: i32, %arg1: memref<64x128xf32, #tpu.memory_space<vmem>>, %arg2: memref<128x128xbf16, #tpu.memory_space<vmem>>, %arg3: memref<1x128xf32, #tpu.memory_space<vmem>>, %arg4: memref<128x128xbf16, #tpu.memory_space<vmem>>, %arg5: memref<1x128xf32, #tpu.memory_space<vmem>>, %arg6: memref<64x128xf32, #tpu.memory_space<vmem>>) attributes {dimension_semantics = [#tpu.dimension_semantics<parallel>], iteration_bounds = array<i64: 2>, scalar_prefetch = 0 : i64, scratch_operands = 0 : i64, tpu.core_type = #tpu.core_type<tc>, window_params = [{transform_indices = @transform_0, window_bounds = array<i64: 64, 128>}, {pipeline_mode = #tpu.pipeline_mode<synchronous>, transform_indices = @transform_1, window_bounds = array<i64: 128, 128>}, {pipeline_mode = #tpu.pipeline_mode<synchronous>, transform_indices = @transform_2, window_bounds = array<i64: 1, 128>}, {pipeline_mode = #tpu.pipeline_mode<synchronous>, transform_indices = @transform_3, window_bounds = array<i64: 128, 128>}, {pipeline_mode = #tpu.pipeline_mode<synchronous>, transform_indices = @transform_4, window_bounds = array<i64: 1, 128>}, {transform_indices = @transform_5, window_bounds = array<i64: 64, 128>}]} {
    %c0 = arith.constant 0 : index
    %c0_0 = arith.constant 0 : index
    %0 = vector.load %arg1[%c0, %c0_0] : memref<64x128xf32, #tpu.memory_space<vmem>>, vector<64x128xf32>
    %1 = arith.truncf %0 : vector<64x128xf32> to vector<64x128xbf16>
    %c0_1 = arith.constant 0 : index
    %c0_2 = arith.constant 0 : index
    %2 = vector.load %arg2[%c0_1, %c0_2] : memref<128x128xbf16, #tpu.memory_space<vmem>>, vector<128x128xbf16>
    %cst = arith.constant dense<0.000000e+00> : vector<64x128xf32>
    %3 = tpu.matmul %1, %2, %cst {dimension_numbers = #tpu.dot_dimension_numbers<[1], [0], [0], [1], [0, 0, 1, 1], [], []>} : vector<64x128xbf16>, vector<128x128xbf16>, vector<64x128xf32> -> vector<64x128xf32>
    %c0_3 = arith.constant 0 : index
    %c0_4 = arith.constant 0 : index
    %4 = vector.load %arg3[%c0_3, %c0_4] : memref<1x128xf32, #tpu.memory_space<vmem>>, vector<1x128xf32>
    %5 = vector.broadcast %4 : vector<1x128xf32> to vector<64x128xf32>
    %6 = arith.addf %3, %5 : vector<64x128xf32>
    %cst_5 = arith.constant 0.000000e+00 : f32
    %7 = vector.broadcast %cst_5 : f32 to vector<64x128xf32>
    %8 = arith.cmpf ogt, %6, %7 : vector<64x128xf32>
    %9 = math.exp %6 : vector<64x128xf32>
    %cst_6 = arith.constant 1.000000e+00 : f32
    %10 = vector.broadcast %cst_6 : f32 to vector<64x128xf32>
    %11 = arith.subf %9, %10 : vector<64x128xf32>
    %12 = arith.select %8, %6, %11 : vector<64x128xi1>, vector<64x128xf32>
    %13 = arith.truncf %12 : vector<64x128xf32> to vector<64x128xbf16>
    %c0_7 = arith.constant 0 : index
    %c0_8 = arith.constant 0 : index
    %14 = vector.load %arg4[%c0_7, %c0_8] : memref<128x128xbf16, #tpu.memory_space<vmem>>, vector<128x128xbf16>
    %cst_9 = arith.constant dense<0.000000e+00> : vector<64x128xf32>
    %15 = tpu.matmul %13, %14, %cst_9 {dimension_numbers = #tpu.dot_dimension_numbers<[1], [0], [0], [1], [0, 0, 1, 1], [], []>} : vector<64x128xbf16>, vector<128x128xbf16>, vector<64x128xf32> -> vector<64x128xf32>
    %c0_10 = arith.constant 0 : index
    %c0_11 = arith.constant 0 : index
    %16 = vector.load %arg5[%c0_10, %c0_11] : memref<1x128xf32, #tpu.memory_space<vmem>>, vector<1x128xf32>
    %17 = vector.broadcast %16 : vector<1x128xf32> to vector<64x128xf32>
    %18 = arith.addf %15, %17 : vector<64x128xf32>
    %cst_12 = arith.constant 0.000000e+00 : f32
    %19 = vector.broadcast %cst_12 : f32 to vector<64x128xf32>
    %20 = arith.cmpf ogt, %18, %19 : vector<64x128xf32>
    %21 = math.exp %18 : vector<64x128xf32>
    %cst_13 = arith.constant 1.000000e+00 : f32
    %22 = vector.broadcast %cst_13 : f32 to vector<64x128xf32>
    %23 = arith.subf %21, %22 : vector<64x128xf32>
    %24 = arith.select %20, %18, %23 : vector<64x128xi1>, vector<64x128xf32>
    %c0_14 = arith.constant 0 : index
    %c0_15 = arith.constant 0 : index
    %25 = vector.load %arg6[%c0_14, %c0_15] : memref<64x128xf32, #tpu.memory_space<vmem>>, vector<64x128xf32>
    tpu.vector_store %arg6[%c0_14, %c0_15], %24 {strides = array<i32>} : memref<64x128xf32, #tpu.memory_space<vmem>>, vector<64x128xf32>,
    return
  }
  func.func @transform_0(%arg0: i32) -> (i32, i32) {
    %c0_i32 = arith.constant 0 : i32
    %c0_i32_0 = arith.constant 0 : i32
    return %arg0, %c0_i32 : i32, i32
  }
  func.func @transform_1(%arg0: i32) -> (i32, i32) {
    %c0_i32 = arith.constant 0 : i32
    %c0_i32_0 = arith.constant 0 : i32
    %c0_i32_1 = arith.constant 0 : i32
    return %c0_i32, %c0_i32_0 : i32, i32
  }
  func.func @transform_2(%arg0: i32) -> (i32, i32) {
    %c0_i32 = arith.constant 0 : i32
    %c0_i32_0 = arith.constant 0 : i32
    %c0_i32_1 = arith.constant 0 : i32
    return %c0_i32, %c0_i32_0 : i32, i32
  }
  func.func @transform_3(%arg0: i32) -> (i32, i32) {
    %c0_i32 = arith.constant 0 : i32
    %c0_i32_0 = arith.constant 0 : i32
    %c0_i32_1 = arith.constant 0 : i32
    return %c0_i32, %c0_i32_0 : i32, i32
  }
  func.func @transform_4(%arg0: i32) -> (i32, i32) {
    %c0_i32 = arith.constant 0 : i32
    %c0_i32_0 = arith.constant 0 : i32
    %c0_i32_1 = arith.constant 0 : i32
    return %c0_i32, %c0_i32_0 : i32, i32
  }
  func.func @transform_5(%arg0: i32) -> (i32, i32) {
    %c0_i32 = arith.constant 0 : i32
    %c0_i32_0 = arith.constant 0 : i32
    return %arg0, %c0_i32 : i32, i32
  }
}

module attributes {stable_mosaic.version = 11 : i64} {
  func.func @_conv_front_kernel(%arg0: i32, %arg1: i32, %arg2: memref<64x128xf32, #tpu.memory_space<vmem>>, %arg3: memref<128x128xbf16, #tpu.memory_space<vmem>>, %arg4: memref<64x1xi32, #tpu.memory_space<vmem>>, %arg5: memref<1x128xi32, #tpu.memory_space<vmem>>, %arg6: memref<1x128xf32, #tpu.memory_space<vmem>>, %arg7: memref<128x256xbf16, #tpu.memory_space<vmem>>, %arg8: memref<1x128xf32, #tpu.memory_space<vmem>>, %arg9: memref<64x128xf32, #tpu.memory_space<vmem>>, %arg10: memref<64x128xf32, #tpu.memory_space<vmem>>, %arg11: memref<64x128xf32, #tpu.memory_space<vmem>>) attributes {dimension_semantics = [#tpu.dimension_semantics<parallel>, #tpu.dimension_semantics<arbitrary>], iteration_bounds = array<i64: 2, 1>, scalar_prefetch = 0 : i64, scratch_operands = 0 : i64, tpu.core_type = #tpu.core_type<tc>, window_params = [{transform_indices = @transform_0, window_bounds = array<i64: 64, 128>}, {transform_indices = @transform_1, window_bounds = array<i64: 128, 128>}, {transform_indices = @transform_2, window_bounds = array<i64: 64, 1>}, {transform_indices = @transform_3, window_bounds = array<i64: 1, 128>}, {transform_indices = @transform_4, window_bounds = array<i64: 1, 128>}, {pipeline_mode = #tpu.pipeline_mode<synchronous>, transform_indices = @transform_5, window_bounds = array<i64: 128, 256>}, {pipeline_mode = #tpu.pipeline_mode<synchronous>, transform_indices = @transform_6, window_bounds = array<i64: 1, 128>}, {transform_indices = @transform_7, window_bounds = array<i64: 64, 128>}, {transform_indices = @transform_8, window_bounds = array<i64: 64, 128>}, {transform_indices = @transform_9, window_bounds = array<i64: 64, 128>}]} {
    %c0 = arith.constant 0 : index
    %c0_0 = arith.constant 0 : index
    %0 = vector.load %arg2[%c0, %c0_0] : memref<64x128xf32, #tpu.memory_space<vmem>>, vector<64x128xf32>
    %1 = arith.truncf %0 : vector<64x128xf32> to vector<64x128xbf16>
    %c0_1 = arith.constant 0 : index
    %c0_2 = arith.constant 0 : index
    %2 = vector.load %arg3[%c0_1, %c0_2] : memref<128x128xbf16, #tpu.memory_space<vmem>>, vector<128x128xbf16>
    %cst = arith.constant dense<0.000000e+00> : vector<64x128xf32>
    %3 = tpu.matmul %1, %2, %cst {dimension_numbers = #tpu.dot_dimension_numbers<[1], [1], [0], [0], [0, 0, 1, 0], [], []>} : vector<64x128xbf16>, vector<128x128xbf16>, vector<64x128xf32> -> vector<64x128xf32>
    %4 = arith.mulf %0, %0 : vector<64x128xf32>
    %cst_3 = arith.constant dense<0.000000e+00> : vector<64xf32>
    %5 = vector.multi_reduction <add>, %4, %cst_3 [1] : vector<64x128xf32> to vector<64xf32>
    %6 = vector.shape_cast %5 : vector<64xf32> to vector<64x1xf32>
    %c0_4 = arith.constant 0 : index
    %c0_5 = arith.constant 0 : index
    %7 = vector.load %arg4[%c0_4, %c0_5] : memref<64x1xi32, #tpu.memory_space<vmem>>, vector<64x1xi32>
    %c0_6 = arith.constant 0 : index
    %c0_7 = arith.constant 0 : index
    %8 = vector.load %arg5[%c0_6, %c0_7] : memref<1x128xi32, #tpu.memory_space<vmem>>, vector<1x128xi32>
    %9 = vector.broadcast %7 : vector<64x1xi32> to vector<64x128xi32>
    %10 = vector.broadcast %8 : vector<1x128xi32> to vector<64x128xi32>
    %11 = arith.cmpi eq, %9, %10 : vector<64x128xi32>
    %cst_8 = arith.constant 2.000000e+00 : f32
    %12 = vector.broadcast %cst_8 : f32 to vector<64x128xf32>
    %13 = arith.mulf %12, %3 : vector<64x128xf32>
    %14 = vector.broadcast %6 : vector<64x1xf32> to vector<64x128xf32>
    %15 = arith.subf %13, %14 : vector<64x128xf32>
    %c0_9 = arith.constant 0 : index
    %c0_10 = arith.constant 0 : index
    %16 = vector.load %arg6[%c0_9, %c0_10] : memref<1x128xf32, #tpu.memory_space<vmem>>, vector<1x128xf32>
    %17 = vector.broadcast %16 : vector<1x128xf32> to vector<64x128xf32>
    %18 = arith.subf %15, %17 : vector<64x128xf32>
    %cst_11 = arith.constant -1.000000e+30 : f32
    %19 = vector.broadcast %cst_11 : f32 to vector<64x128xf32>
    %20 = arith.select %11, %18, %19 : vector<64x128xi1>, vector<64x128xf32>
    %c0_12 = arith.constant 0 : index
    %c0_13 = arith.constant 0 : index
    %21 = vector.load %arg9[%c0_12, %c0_13] : memref<64x128xf32, #tpu.memory_space<vmem>>, vector<64x128xf32>
    tpu.vector_store %arg9[%c0_12, %c0_13], %20 {strides = array<i32>} : memref<64x128xf32, #tpu.memory_space<vmem>>, vector<64x128xf32>,
    %c0_i32 = arith.constant 0 : i32
    %22 = arith.cmpi eq, %arg1, %c0_i32 : i32
    %23 = arith.extui %22 : i1 to i32
    %c0_i32_14 = arith.constant 0 : i32
    %24 = arith.cmpi ne, %23, %c0_i32_14 : i32
    scf.if %24 {
      %c0_15 = arith.constant 0 : index
      %c0_16 = arith.constant 0 : index
      %25 = vector.load %arg7[%c0_15, %c0_16] : memref<128x256xbf16, #tpu.memory_space<vmem>>, vector<128x256xbf16>
      %cst_17 = arith.constant dense<0.000000e+00> : vector<64x256xf32>
      %26 = tpu.matmul %1, %25, %cst_17 {dimension_numbers = #tpu.dot_dimension_numbers<[1], [0], [0], [1], [0, 0, 1, 1], [], []>} : vector<64x128xbf16>, vector<128x256xbf16>, vector<64x256xf32> -> vector<64x256xf32>
      %27 = vector.extract_strided_slice %26 {offsets = [0, 0], sizes = [64, 128], strides = [1, 1]} : vector<64x256xf32> to vector<64x128xf32>
      %c0_18 = arith.constant 0 : index
      %c0_19 = arith.constant 0 : index
      %28 = vector.load %arg8[%c0_18, %c0_19] : memref<1x128xf32, #tpu.memory_space<vmem>>, vector<1x128xf32>
      %29 = vector.broadcast %28 : vector<1x128xf32> to vector<64x128xf32>
      %30 = arith.addf %27, %29 : vector<64x128xf32>
      %c0_20 = arith.constant 0 : index
      %c0_21 = arith.constant 0 : index
      %31 = vector.load %arg10[%c0_20, %c0_21] : memref<64x128xf32, #tpu.memory_space<vmem>>, vector<64x128xf32>
      tpu.vector_store %arg10[%c0_20, %c0_21], %30 {strides = array<i32>} : memref<64x128xf32, #tpu.memory_space<vmem>>, vector<64x128xf32>,
      %32 = vector.extract_strided_slice %26 {offsets = [0, 128], sizes = [64, 128], strides = [1, 1]} : vector<64x256xf32> to vector<64x128xf32>
      %c0_22 = arith.constant 0 : index
      %c0_23 = arith.constant 0 : index
      %33 = vector.load %arg11[%c0_22, %c0_23] : memref<64x128xf32, #tpu.memory_space<vmem>>, vector<64x128xf32>
      tpu.vector_store %arg11[%c0_22, %c0_23], %32 {strides = array<i32>} : memref<64x128xf32, #tpu.memory_space<vmem>>, vector<64x128xf32>,
    } else {
    }
    return
  }
  func.func @transform_0(%arg0: i32, %arg1: i32) -> (i32, i32) {
    %c0_i32 = arith.constant 0 : i32
    %c0_i32_0 = arith.constant 0 : i32
    return %arg0, %c0_i32 : i32, i32
  }
  func.func @transform_1(%arg0: i32, %arg1: i32) -> (i32, i32) {
    %c0_i32 = arith.constant 0 : i32
    %c0_i32_0 = arith.constant 0 : i32
    return %arg1, %c0_i32 : i32, i32
  }
  func.func @transform_2(%arg0: i32, %arg1: i32) -> (i32, i32) {
    %c0_i32 = arith.constant 0 : i32
    %c0_i32_0 = arith.constant 0 : i32
    return %arg0, %c0_i32 : i32, i32
  }
  func.func @transform_3(%arg0: i32, %arg1: i32) -> (i32, i32) {
    %c0_i32 = arith.constant 0 : i32
    %c0_i32_0 = arith.constant 0 : i32
    return %c0_i32, %arg1 : i32, i32
  }
  func.func @transform_4(%arg0: i32, %arg1: i32) -> (i32, i32) {
    %c0_i32 = arith.constant 0 : i32
    %c0_i32_0 = arith.constant 0 : i32
    return %c0_i32, %arg1 : i32, i32
  }
  func.func @transform_5(%arg0: i32, %arg1: i32) -> (i32, i32) {
    %c0_i32 = arith.constant 0 : i32
    %c0_i32_0 = arith.constant 0 : i32
    %c0_i32_1 = arith.constant 0 : i32
    return %c0_i32, %c0_i32_0 : i32, i32
  }
  func.func @transform_6(%arg0: i32, %arg1: i32) -> (i32, i32) {
    %c0_i32 = arith.constant 0 : i32
    %c0_i32_0 = arith.constant 0 : i32
    %c0_i32_1 = arith.constant 0 : i32
    return %c0_i32, %c0_i32_0 : i32, i32
  }
  func.func @transform_7(%arg0: i32, %arg1: i32) -> (i32, i32) {
    %c0_i32 = arith.constant 0 : i32
    return %arg0, %arg1 : i32, i32
  }
  func.func @transform_8(%arg0: i32, %arg1: i32) -> (i32, i32) {
    %c0_i32 = arith.constant 0 : i32
    %c0_i32_0 = arith.constant 0 : i32
    return %arg0, %c0_i32 : i32, i32
  }
  func.func @transform_9(%arg0: i32, %arg1: i32) -> (i32, i32) {
    %c0_i32 = arith.constant 0 : i32
    %c0_i32_0 = arith.constant 0 : i32
    return %arg0, %c0_i32 : i32, i32
  }
}

module attributes {stable_mosaic.version = 11 : i64} {
  func.func @_edge_aggregate_kernel(%arg0: i32, %arg1: memref<3072xi32, #tpu.memory_space<smem>>, %arg2: memref<64x128xf32, #tpu.memory_space<vmem>>, %arg3: memref<128x128xf32, #tpu.memory_space<vmem>>, %arg4: memref<64x128xf32, #tpu.memory_space<vmem>>) attributes {dimension_semantics = [#tpu.dimension_semantics<parallel>], iteration_bounds = array<i64: 2>, scalar_prefetch = 1 : i64, scratch_operands = 0 : i64, tpu.core_type = #tpu.core_type<tc>, window_params = [{transform_indices = @transform_0, window_bounds = array<i64: 64, 128>}, {pipeline_mode = #tpu.pipeline_mode<synchronous>, transform_indices = @transform_1, window_bounds = array<i64: 128, 128>}, {transform_indices = @transform_2, window_bounds = array<i64: 64, 128>}]} {
    %c0_i32 = arith.constant 0 : i32
    %c64_i32 = arith.constant 64 : i32
    %0 = arith.addi %c0_i32, %c64_i32 : i32
    %c1_i32 = arith.constant 1 : i32
    scf.for %arg5 = %c0_i32 to %0 step %c1_i32  : i32 {
      %c1_i32_1 = arith.constant 1 : i32
      %1 = arith.muli %arg5, %c1_i32_1 : i32
      %c0_i32_2 = arith.constant 0 : i32
      %2 = arith.addi %c0_i32_2, %1 : i32
      %c64_i32_3 = arith.constant 64 : i32
      %3 = arith.muli %arg0, %c64_i32_3 : i32
      %4 = arith.addi %3, %2 : i32
      %c24_i32 = arith.constant 24 : i32
      %5 = arith.muli %4, %c24_i32 : i32
      %6 = arith.index_cast %5 : i32 to index
      %7 = memref.load %arg1[%6] : memref<3072xi32, #tpu.memory_space<smem>>
      %8 = arith.index_cast %7 : i32 to index
      %c0 = arith.constant 0 : index
      %9 = vector.load %arg3[%8, %c0] : memref<128x128xf32, #tpu.memory_space<vmem>>, vector<1x128xf32>
      %c1_i32_4 = arith.constant 1 : i32
      %10 = arith.addi %5, %c1_i32_4 : i32
      %11 = arith.index_cast %10 : i32 to index
      %12 = memref.load %arg1[%11] : memref<3072xi32, #tpu.memory_space<smem>>
      %13 = arith.index_cast %12 : i32 to index
      %c0_5 = arith.constant 0 : index
      %14 = vector.load %arg3[%13, %c0_5] : memref<128x128xf32, #tpu.memory_space<vmem>>, vector<1x128xf32>
      %15 = arith.maximumf %9, %14 : vector<1x128xf32>
      %c2_i32 = arith.constant 2 : i32
      %16 = arith.addi %5, %c2_i32 : i32
      %17 = arith.index_cast %16 : i32 to index
      %18 = memref.load %arg1[%17] : memref<3072xi32, #tpu.memory_space<smem>>
      %19 = arith.index_cast %18 : i32 to index
      %c0_6 = arith.constant 0 : index
      %20 = vector.load %arg3[%19, %c0_6] : memref<128x128xf32, #tpu.memory_space<vmem>>, vector<1x128xf32>
      %21 = arith.maximumf %15, %20 : vector<1x128xf32>
      %c3_i32 = arith.constant 3 : i32
      %22 = arith.addi %5, %c3_i32 : i32
      %23 = arith.index_cast %22 : i32 to index
      %24 = memref.load %arg1[%23] : memref<3072xi32, #tpu.memory_space<smem>>
      %25 = arith.index_cast %24 : i32 to index
      %c0_7 = arith.constant 0 : index
      %26 = vector.load %arg3[%25, %c0_7] : memref<128x128xf32, #tpu.memory_space<vmem>>, vector<1x128xf32>
      %27 = arith.maximumf %21, %26 : vector<1x128xf32>
      %c4_i32 = arith.constant 4 : i32
      %28 = arith.addi %5, %c4_i32 : i32
      %29 = arith.index_cast %28 : i32 to index
      %30 = memref.load %arg1[%29] : memref<3072xi32, #tpu.memory_space<smem>>
      %31 = arith.index_cast %30 : i32 to index
      %c0_8 = arith.constant 0 : index
      %32 = vector.load %arg3[%31, %c0_8] : memref<128x128xf32, #tpu.memory_space<vmem>>, vector<1x128xf32>
      %33 = arith.maximumf %27, %32 : vector<1x128xf32>
      %c5_i32 = arith.constant 5 : i32
      %34 = arith.addi %5, %c5_i32 : i32
      %35 = arith.index_cast %34 : i32 to index
      %36 = memref.load %arg1[%35] : memref<3072xi32, #tpu.memory_space<smem>>
      %37 = arith.index_cast %36 : i32 to index
      %c0_9 = arith.constant 0 : index
      %38 = vector.load %arg3[%37, %c0_9] : memref<128x128xf32, #tpu.memory_space<vmem>>, vector<1x128xf32>
      %39 = arith.maximumf %33, %38 : vector<1x128xf32>
      %c6_i32 = arith.constant 6 : i32
      %40 = arith.addi %5, %c6_i32 : i32
      %41 = arith.index_cast %40 : i32 to index
      %42 = memref.load %arg1[%41] : memref<3072xi32, #tpu.memory_space<smem>>
      %43 = arith.index_cast %42 : i32 to index
      %c0_10 = arith.constant 0 : index
      %44 = vector.load %arg3[%43, %c0_10] : memref<128x128xf32, #tpu.memory_space<vmem>>, vector<1x128xf32>
      %45 = arith.maximumf %39, %44 : vector<1x128xf32>
      %c7_i32 = arith.constant 7 : i32
      %46 = arith.addi %5, %c7_i32 : i32
      %47 = arith.index_cast %46 : i32 to index
      %48 = memref.load %arg1[%47] : memref<3072xi32, #tpu.memory_space<smem>>
      %49 = arith.index_cast %48 : i32 to index
      %c0_11 = arith.constant 0 : index
      %50 = vector.load %arg3[%49, %c0_11] : memref<128x128xf32, #tpu.memory_space<vmem>>, vector<1x128xf32>
      %51 = arith.maximumf %45, %50 : vector<1x128xf32>
      %c8_i32 = arith.constant 8 : i32
      %52 = arith.addi %5, %c8_i32 : i32
      %53 = arith.index_cast %52 : i32 to index
      %54 = memref.load %arg1[%53] : memref<3072xi32, #tpu.memory_space<smem>>
      %55 = arith.index_cast %54 : i32 to index
      %c0_12 = arith.constant 0 : index
      %56 = vector.load %arg3[%55, %c0_12] : memref<128x128xf32, #tpu.memory_space<vmem>>, vector<1x128xf32>
      %57 = arith.maximumf %51, %56 : vector<1x128xf32>
      %c9_i32 = arith.constant 9 : i32
      %58 = arith.addi %5, %c9_i32 : i32
      %59 = arith.index_cast %58 : i32 to index
      %60 = memref.load %arg1[%59] : memref<3072xi32, #tpu.memory_space<smem>>
      %61 = arith.index_cast %60 : i32 to index
      %c0_13 = arith.constant 0 : index
      %62 = vector.load %arg3[%61, %c0_13] : memref<128x128xf32, #tpu.memory_space<vmem>>, vector<1x128xf32>
      %63 = arith.maximumf %57, %62 : vector<1x128xf32>
      %c10_i32 = arith.constant 10 : i32
      %64 = arith.addi %5, %c10_i32 : i32
      %65 = arith.index_cast %64 : i32 to index
      %66 = memref.load %arg1[%65] : memref<3072xi32, #tpu.memory_space<smem>>
      %67 = arith.index_cast %66 : i32 to index
      %c0_14 = arith.constant 0 : index
      %68 = vector.load %arg3[%67, %c0_14] : memref<128x128xf32, #tpu.memory_space<vmem>>, vector<1x128xf32>
      %69 = arith.maximumf %63, %68 : vector<1x128xf32>
      %c11_i32 = arith.constant 11 : i32
      %70 = arith.addi %5, %c11_i32 : i32
      %71 = arith.index_cast %70 : i32 to index
      %72 = memref.load %arg1[%71] : memref<3072xi32, #tpu.memory_space<smem>>
      %73 = arith.index_cast %72 : i32 to index
      %c0_15 = arith.constant 0 : index
      %74 = vector.load %arg3[%73, %c0_15] : memref<128x128xf32, #tpu.memory_space<vmem>>, vector<1x128xf32>
      %75 = arith.maximumf %69, %74 : vector<1x128xf32>
      %c12_i32 = arith.constant 12 : i32
      %76 = arith.addi %5, %c12_i32 : i32
      %77 = arith.index_cast %76 : i32 to index
      %78 = memref.load %arg1[%77] : memref<3072xi32, #tpu.memory_space<smem>>
      %79 = arith.index_cast %78 : i32 to index
      %c0_16 = arith.constant 0 : index
      %80 = vector.load %arg3[%79, %c0_16] : memref<128x128xf32, #tpu.memory_space<vmem>>, vector<1x128xf32>
      %81 = arith.maximumf %75, %80 : vector<1x128xf32>
      %c13_i32 = arith.constant 13 : i32
      %82 = arith.addi %5, %c13_i32 : i32
      %83 = arith.index_cast %82 : i32 to index
      %84 = memref.load %arg1[%83] : memref<3072xi32, #tpu.memory_space<smem>>
      %85 = arith.index_cast %84 : i32 to index
      %c0_17 = arith.constant 0 : index
      %86 = vector.load %arg3[%85, %c0_17] : memref<128x128xf32, #tpu.memory_space<vmem>>, vector<1x128xf32>
      %87 = arith.maximumf %81, %86 : vector<1x128xf32>
      %c14_i32 = arith.constant 14 : i32
      %88 = arith.addi %5, %c14_i32 : i32
      %89 = arith.index_cast %88 : i32 to index
      %90 = memref.load %arg1[%89] : memref<3072xi32, #tpu.memory_space<smem>>
      %91 = arith.index_cast %90 : i32 to index
      %c0_18 = arith.constant 0 : index
      %92 = vector.load %arg3[%91, %c0_18] : memref<128x128xf32, #tpu.memory_space<vmem>>, vector<1x128xf32>
      %93 = arith.maximumf %87, %92 : vector<1x128xf32>
      %c15_i32 = arith.constant 15 : i32
      %94 = arith.addi %5, %c15_i32 : i32
      %95 = arith.index_cast %94 : i32 to index
      %96 = memref.load %arg1[%95] : memref<3072xi32, #tpu.memory_space<smem>>
      %97 = arith.index_cast %96 : i32 to index
      %c0_19 = arith.constant 0 : index
      %98 = vector.load %arg3[%97, %c0_19] : memref<128x128xf32, #tpu.memory_space<vmem>>, vector<1x128xf32>
      %99 = arith.maximumf %93, %98 : vector<1x128xf32>
      %c16_i32 = arith.constant 16 : i32
      %100 = arith.addi %5, %c16_i32 : i32
      %101 = arith.index_cast %100 : i32 to index
      %102 = memref.load %arg1[%101] : memref<3072xi32, #tpu.memory_space<smem>>
      %103 = arith.index_cast %102 : i32 to index
      %c0_20 = arith.constant 0 : index
      %104 = vector.load %arg3[%103, %c0_20] : memref<128x128xf32, #tpu.memory_space<vmem>>, vector<1x128xf32>
      %105 = arith.maximumf %99, %104 : vector<1x128xf32>
      %c17_i32 = arith.constant 17 : i32
      %106 = arith.addi %5, %c17_i32 : i32
      %107 = arith.index_cast %106 : i32 to index
      %108 = memref.load %arg1[%107] : memref<3072xi32, #tpu.memory_space<smem>>
      %109 = arith.index_cast %108 : i32 to index
      %c0_21 = arith.constant 0 : index
      %110 = vector.load %arg3[%109, %c0_21] : memref<128x128xf32, #tpu.memory_space<vmem>>, vector<1x128xf32>
      %111 = arith.maximumf %105, %110 : vector<1x128xf32>
      %c18_i32 = arith.constant 18 : i32
      %112 = arith.addi %5, %c18_i32 : i32
      %113 = arith.index_cast %112 : i32 to index
      %114 = memref.load %arg1[%113] : memref<3072xi32, #tpu.memory_space<smem>>
      %115 = arith.index_cast %114 : i32 to index
      %c0_22 = arith.constant 0 : index
      %116 = vector.load %arg3[%115, %c0_22] : memref<128x128xf32, #tpu.memory_space<vmem>>, vector<1x128xf32>
      %117 = arith.maximumf %111, %116 : vector<1x128xf32>
      %c19_i32 = arith.constant 19 : i32
      %118 = arith.addi %5, %c19_i32 : i32
      %119 = arith.index_cast %118 : i32 to index
      %120 = memref.load %arg1[%119] : memref<3072xi32, #tpu.memory_space<smem>>
      %121 = arith.index_cast %120 : i32 to index
      %c0_23 = arith.constant 0 : index
      %122 = vector.load %arg3[%121, %c0_23] : memref<128x128xf32, #tpu.memory_space<vmem>>, vector<1x128xf32>
      %123 = arith.maximumf %117, %122 : vector<1x128xf32>
      %c20_i32 = arith.constant 20 : i32
      %124 = arith.addi %5, %c20_i32 : i32
      %125 = arith.index_cast %124 : i32 to index
      %126 = memref.load %arg1[%125] : memref<3072xi32, #tpu.memory_space<smem>>
      %127 = arith.index_cast %126 : i32 to index
      %c0_24 = arith.constant 0 : index
      %128 = vector.load %arg3[%127, %c0_24] : memref<128x128xf32, #tpu.memory_space<vmem>>, vector<1x128xf32>
      %129 = arith.maximumf %123, %128 : vector<1x128xf32>
      %c21_i32 = arith.constant 21 : i32
      %130 = arith.addi %5, %c21_i32 : i32
      %131 = arith.index_cast %130 : i32 to index
      %132 = memref.load %arg1[%131] : memref<3072xi32, #tpu.memory_space<smem>>
      %133 = arith.index_cast %132 : i32 to index
      %c0_25 = arith.constant 0 : index
      %134 = vector.load %arg3[%133, %c0_25] : memref<128x128xf32, #tpu.memory_space<vmem>>, vector<1x128xf32>
      %135 = arith.maximumf %129, %134 : vector<1x128xf32>
      %c22_i32 = arith.constant 22 : i32
      %136 = arith.addi %5, %c22_i32 : i32
      %137 = arith.index_cast %136 : i32 to index
      %138 = memref.load %arg1[%137] : memref<3072xi32, #tpu.memory_space<smem>>
      %139 = arith.index_cast %138 : i32 to index
      %c0_26 = arith.constant 0 : index
      %140 = vector.load %arg3[%139, %c0_26] : memref<128x128xf32, #tpu.memory_space<vmem>>, vector<1x128xf32>
      %141 = arith.maximumf %135, %140 : vector<1x128xf32>
      %c23_i32 = arith.constant 23 : i32
      %142 = arith.addi %5, %c23_i32 : i32
      %143 = arith.index_cast %142 : i32 to index
      %144 = memref.load %arg1[%143] : memref<3072xi32, #tpu.memory_space<smem>>
      %145 = arith.index_cast %144 : i32 to index
      %c0_27 = arith.constant 0 : index
      %146 = vector.load %arg3[%145, %c0_27] : memref<128x128xf32, #tpu.memory_space<vmem>>, vector<1x128xf32>
      %147 = arith.maximumf %141, %146 : vector<1x128xf32>
      %148 = arith.index_cast %2 : i32 to index
      %c0_28 = arith.constant 0 : index
      %149 = vector.load %arg2[%148, %c0_28] : memref<64x128xf32, #tpu.memory_space<vmem>>, vector<1x128xf32>
      %150 = arith.addf %149, %147 : vector<1x128xf32>
      %cst = arith.constant 0.000000e+00 : f32
      %151 = vector.broadcast %cst : f32 to vector<1x128xf32>
      %152 = arith.cmpf ogt, %150, %151 : vector<1x128xf32>
      %153 = math.exp %150 : vector<1x128xf32>
      %cst_29 = arith.constant 1.000000e+00 : f32
      %154 = vector.broadcast %cst_29 : f32 to vector<1x128xf32>
      %155 = arith.subf %153, %154 : vector<1x128xf32>
      %156 = arith.select %152, %150, %155 : vector<1x128xi1>, vector<1x128xf32>
      %157 = arith.index_cast %2 : i32 to index
      %c0_30 = arith.constant 0 : index
      %158 = vector.load %arg4[%157, %c0_30] : memref<64x128xf32, #tpu.memory_space<vmem>>, vector<1x128xf32>
      tpu.vector_store %arg4[%157, %c0_30], %156 {strides = array<i32>} : memref<64x128xf32, #tpu.memory_space<vmem>>, vector<1x128xf32>,
    }
    %c64_i32_0 = arith.constant 64 : i32
    return
  }
  func.func @transform_0(%arg0: i32, %arg1: memref<3072xi32, #tpu.memory_space<smem>>) -> (i32, i32) {
    %c0_i32 = arith.constant 0 : i32
    %c0_i32_0 = arith.constant 0 : i32
    return %arg0, %c0_i32 : i32, i32
  }
  func.func @transform_1(%arg0: i32, %arg1: memref<3072xi32, #tpu.memory_space<smem>>) -> (i32, i32) {
    %c0_i32 = arith.constant 0 : i32
    %c0_i32_0 = arith.constant 0 : i32
    %c0_i32_1 = arith.constant 0 : i32
    return %c0_i32, %c0_i32_0 : i32, i32
  }
  func.func @transform_2(%arg0: i32, %arg1: memref<3072xi32, #tpu.memory_space<smem>>) -> (i32, i32) {
    %c0_i32 = arith.constant 0 : i32
    %c0_i32_0 = arith.constant 0 : i32
    return %arg0, %c0_i32 : i32, i32
  }
}

module attributes {stable_mosaic.version = 11 : i64} {
  func.func @_pool_head_kernel(%arg0: i32, %arg1: memref<128x128xf32, #tpu.memory_space<vmem>>, %arg2: memref<1x128xi32, #tpu.memory_space<vmem>>, %arg3: memref<128x64xf32, #tpu.memory_space<vmem>>, %arg4: memref<1x64xf32, #tpu.memory_space<vmem>>, %arg5: memref<64x32xf32, #tpu.memory_space<vmem>>, %arg6: memref<1x32xf32, #tpu.memory_space<vmem>>, %arg7: memref<32x32xf32, #tpu.memory_space<vmem>>, %arg8: memref<1x32xf32, #tpu.memory_space<vmem>>, %arg9: memref<32x8xf32, #tpu.memory_space<vmem>>, %arg10: memref<1x8xf32, #tpu.memory_space<vmem>>, %arg11: memref<2x8xf32, #tpu.memory_space<vmem>>) attributes {dimension_semantics = [#tpu.dimension_semantics<arbitrary>], iteration_bounds = array<i64: 1>, scalar_prefetch = 0 : i64, scratch_operands = 0 : i64, tpu.core_type = #tpu.core_type<tc>, window_params = [{pipeline_mode = #tpu.pipeline_mode<synchronous>, transform_indices = @transform_0, window_bounds = array<i64: 128, 128>}, {pipeline_mode = #tpu.pipeline_mode<synchronous>, transform_indices = @transform_1, window_bounds = array<i64: 1, 128>}, {pipeline_mode = #tpu.pipeline_mode<synchronous>, transform_indices = @transform_2, window_bounds = array<i64: 128, 64>}, {pipeline_mode = #tpu.pipeline_mode<synchronous>, transform_indices = @transform_3, window_bounds = array<i64: 1, 64>}, {pipeline_mode = #tpu.pipeline_mode<synchronous>, transform_indices = @transform_4, window_bounds = array<i64: 64, 32>}, {pipeline_mode = #tpu.pipeline_mode<synchronous>, transform_indices = @transform_5, window_bounds = array<i64: 1, 32>}, {pipeline_mode = #tpu.pipeline_mode<synchronous>, transform_indices = @transform_6, window_bounds = array<i64: 32, 32>}, {pipeline_mode = #tpu.pipeline_mode<synchronous>, transform_indices = @transform_7, window_bounds = array<i64: 1, 32>}, {pipeline_mode = #tpu.pipeline_mode<synchronous>, transform_indices = @transform_8, window_bounds = array<i64: 32, 8>}, {pipeline_mode = #tpu.pipeline_mode<synchronous>, transform_indices = @transform_9, window_bounds = array<i64: 1, 8>}, {pipeline_mode = #tpu.pipeline_mode<synchronous>, transform_indices = @transform_10, window_bounds = array<i64: 2, 8>}]} {
    %0 = tpu.iota {dimensions = array<i32: 0>} : vector<2x128xi32>
    %c0 = arith.constant 0 : index
    %c0_0 = arith.constant 0 : index
    %1 = vector.load %arg2[%c0, %c0_0] : memref<1x128xi32, #tpu.memory_space<vmem>>, vector<1x128xi32>
    %2 = vector.broadcast %1 : vector<1x128xi32> to vector<2x128xi32>
    %3 = arith.cmpi eq, %0, %2 : vector<2x128xi32>
    %4 = arith.extui %3 : vector<2x128xi1> to vector<2x128xi32>
    %5 = arith.sitofp %4 : vector<2x128xi32> to vector<2x128xf32>
    %c0_1 = arith.constant 0 : index
    %c0_2 = arith.constant 0 : index
    %6 = vector.load %arg1[%c0_1, %c0_2] : memref<128x128xf32, #tpu.memory_space<vmem>>, vector<128x128xf32>
    %cst = arith.constant dense<0.000000e+00> : vector<2x128xf32>
    %7 = tpu.matmul %5, %6, %cst {dimension_numbers = #tpu.dot_dimension_numbers<[1], [0], [0], [1], [0, 0, 1, 1], [], []>} : vector<2x128xf32>, vector<128x128xf32>, vector<2x128xf32> -> vector<2x128xf32>
    %c0_3 = arith.constant 0 : index
    %c0_4 = arith.constant 0 : index
    %8 = vector.load %arg3[%c0_3, %c0_4] : memref<128x64xf32, #tpu.memory_space<vmem>>, vector<128x64xf32>
    %cst_5 = arith.constant dense<0.000000e+00> : vector<2x64xf32>
    %9 = tpu.matmul %7, %8, %cst_5 {dimension_numbers = #tpu.dot_dimension_numbers<[1], [0], [0], [1], [0, 0, 1, 1], [], []>} : vector<2x128xf32>, vector<128x64xf32>, vector<2x64xf32> -> vector<2x64xf32>
    %c0_6 = arith.constant 0 : index
    %c0_7 = arith.constant 0 : index
    %10 = vector.load %arg4[%c0_6, %c0_7] : memref<1x64xf32, #tpu.memory_space<vmem>>, vector<1x64xf32>
    %11 = vector.broadcast %10 : vector<1x64xf32> to vector<2x64xf32>
    %12 = arith.addf %9, %11 : vector<2x64xf32>
    %cst_8 = arith.constant 0.000000e+00 : f32
    %13 = vector.broadcast %cst_8 : f32 to vector<2x64xf32>
    %14 = arith.cmpf ogt, %12, %13 : vector<2x64xf32>
    %15 = math.exp %12 : vector<2x64xf32>
    %cst_9 = arith.constant 1.000000e+00 : f32
    %16 = vector.broadcast %cst_9 : f32 to vector<2x64xf32>
    %17 = arith.subf %15, %16 : vector<2x64xf32>
    %18 = arith.select %14, %12, %17 : vector<2x64xi1>, vector<2x64xf32>
    %c0_10 = arith.constant 0 : index
    %c0_11 = arith.constant 0 : index
    %19 = vector.load %arg5[%c0_10, %c0_11] : memref<64x32xf32, #tpu.memory_space<vmem>>, vector<64x32xf32>
    %cst_12 = arith.constant dense<0.000000e+00> : vector<2x32xf32>
    %20 = tpu.matmul %18, %19, %cst_12 {dimension_numbers = #tpu.dot_dimension_numbers<[1], [0], [0], [1], [0, 0, 1, 1], [], []>} : vector<2x64xf32>, vector<64x32xf32>, vector<2x32xf32> -> vector<2x32xf32>
    %c0_13 = arith.constant 0 : index
    %c0_14 = arith.constant 0 : index
    %21 = vector.load %arg6[%c0_13, %c0_14] : memref<1x32xf32, #tpu.memory_space<vmem>>, vector<1x32xf32>
    %22 = vector.broadcast %21 : vector<1x32xf32> to vector<2x32xf32>
    %23 = arith.addf %20, %22 : vector<2x32xf32>
    %cst_15 = arith.constant 0.000000e+00 : f32
    %24 = vector.broadcast %cst_15 : f32 to vector<2x32xf32>
    %25 = arith.cmpf ogt, %23, %24 : vector<2x32xf32>
    %26 = math.exp %23 : vector<2x32xf32>
    %cst_16 = arith.constant 1.000000e+00 : f32
    %27 = vector.broadcast %cst_16 : f32 to vector<2x32xf32>
    %28 = arith.subf %26, %27 : vector<2x32xf32>
    %29 = arith.select %25, %23, %28 : vector<2x32xi1>, vector<2x32xf32>
    %c0_17 = arith.constant 0 : index
    %c0_18 = arith.constant 0 : index
    %30 = vector.load %arg7[%c0_17, %c0_18] : memref<32x32xf32, #tpu.memory_space<vmem>>, vector<32x32xf32>
    %cst_19 = arith.constant dense<0.000000e+00> : vector<2x32xf32>
    %31 = tpu.matmul %29, %30, %cst_19 {dimension_numbers = #tpu.dot_dimension_numbers<[1], [0], [0], [1], [0, 0, 1, 1], [], []>} : vector<2x32xf32>, vector<32x32xf32>, vector<2x32xf32> -> vector<2x32xf32>
    %c0_20 = arith.constant 0 : index
    %c0_21 = arith.constant 0 : index
    %32 = vector.load %arg8[%c0_20, %c0_21] : memref<1x32xf32, #tpu.memory_space<vmem>>, vector<1x32xf32>
    %33 = vector.broadcast %32 : vector<1x32xf32> to vector<2x32xf32>
    %34 = arith.addf %31, %33 : vector<2x32xf32>
    %cst_22 = arith.constant 0.000000e+00 : f32
    %35 = vector.broadcast %cst_22 : f32 to vector<2x32xf32>
    %36 = arith.cmpf ogt, %34, %35 : vector<2x32xf32>
    %37 = math.exp %34 : vector<2x32xf32>
    %cst_23 = arith.constant 1.000000e+00 : f32
    %38 = vector.broadcast %cst_23 : f32 to vector<2x32xf32>
    %39 = arith.subf %37, %38 : vector<2x32xf32>
    %40 = arith.select %36, %34, %39 : vector<2x32xi1>, vector<2x32xf32>
    %c0_24 = arith.constant 0 : index
    %c0_25 = arith.constant 0 : index
    %41 = vector.load %arg9[%c0_24, %c0_25] : memref<32x8xf32, #tpu.memory_space<vmem>>, vector<32x8xf32>
    %cst_26 = arith.constant dense<0.000000e+00> : vector<2x8xf32>
    %42 = tpu.matmul %40, %41, %cst_26 {dimension_numbers = #tpu.dot_dimension_numbers<[1], [0], [0], [1], [0, 0, 1, 1], [], []>} : vector<2x32xf32>, vector<32x8xf32>, vector<2x8xf32> -> vector<2x8xf32>
    %c0_27 = arith.constant 0 : index
    %c0_28 = arith.constant 0 : index
    %43 = vector.load %arg10[%c0_27, %c0_28] : memref<1x8xf32, #tpu.memory_space<vmem>>, vector<1x8xf32>
    %44 = vector.broadcast %43 : vector<1x8xf32> to vector<2x8xf32>
    %45 = arith.addf %42, %44 : vector<2x8xf32>
    %c0_29 = arith.constant 0 : index
    %c0_30 = arith.constant 0 : index
    %46 = vector.load %arg11[%c0_29, %c0_30] : memref<2x8xf32, #tpu.memory_space<vmem>>, vector<2x8xf32>
    tpu.vector_store %arg11[%c0_29, %c0_30], %45 {strides = array<i32>} : memref<2x8xf32, #tpu.memory_space<vmem>>, vector<2x8xf32>,
    return
  }
  func.func @transform_0(%arg0: i32) -> (i32, i32) {
    %c0_i32 = arith.constant 0 : i32
    %c0_i32_0 = arith.constant 0 : i32
    %c0_i32_1 = arith.constant 0 : i32
    return %c0_i32, %c0_i32_0 : i32, i32
  }
  func.func @transform_1(%arg0: i32) -> (i32, i32) {
    %c0_i32 = arith.constant 0 : i32
    %c0_i32_0 = arith.constant 0 : i32
    %c0_i32_1 = arith.constant 0 : i32
    return %c0_i32, %c0_i32_0 : i32, i32
  }
  func.func @transform_2(%arg0: i32) -> (i32, i32) {
    %c0_i32 = arith.constant 0 : i32
    %c0_i32_0 = arith.constant 0 : i32
    %c0_i32_1 = arith.constant 0 : i32
    return %c0_i32, %c0_i32_0 : i32, i32
  }
  func.func @transform_3(%arg0: i32) -> (i32, i32) {
    %c0_i32 = arith.constant 0 : i32
    %c0_i32_0 = arith.constant 0 : i32
    %c0_i32_1 = arith.constant 0 : i32
    return %c0_i32, %c0_i32_0 : i32, i32
  }
  func.func @transform_4(%arg0: i32) -> (i32, i32) {
    %c0_i32 = arith.constant 0 : i32
    %c0_i32_0 = arith.constant 0 : i32
    %c0_i32_1 = arith.constant 0 : i32
    return %c0_i32, %c0_i32_0 : i32, i32
  }
  func.func @transform_5(%arg0: i32) -> (i32, i32) {
    %c0_i32 = arith.constant 0 : i32
    %c0_i32_0 = arith.constant 0 : i32
    %c0_i32_1 = arith.constant 0 : i32
    return %c0_i32, %c0_i32_0 : i32, i32
  }
  func.func @transform_6(%arg0: i32) -> (i32, i32) {
    %c0_i32 = arith.constant 0 : i32
    %c0_i32_0 = arith.constant 0 : i32
    %c0_i32_1 = arith.constant 0 : i32
    return %c0_i32, %c0_i32_0 : i32, i32
  }
  func.func @transform_7(%arg0: i32) -> (i32, i32) {
    %c0_i32 = arith.constant 0 : i32
    %c0_i32_0 = arith.constant 0 : i32
    %c0_i32_1 = arith.constant 0 : i32
    return %c0_i32, %c0_i32_0 : i32, i32
  }
  func.func @transform_8(%arg0: i32) -> (i32, i32) {
    %c0_i32 = arith.constant 0 : i32
    %c0_i32_0 = arith.constant 0 : i32
    %c0_i32_1 = arith.constant 0 : i32
    return %c0_i32, %c0_i32_0 : i32, i32
  }
  func.func @transform_9(%arg0: i32) -> (i32, i32) {
    %c0_i32 = arith.constant 0 : i32
    %c0_i32_0 = arith.constant 0 : i32
    %c0_i32_1 = arith.constant 0 : i32
    return %c0_i32, %c0_i32_0 : i32, i32
  }
  func.func @transform_10(%arg0: i32) -> (i32, i32) {
    %c0_i32 = arith.constant 0 : i32
    %c0_i32_0 = arith.constant 0 : i32
    %c0_i32_1 = arith.constant 0 : i32
    return %c0_i32, %c0_i32_0 : i32, i32
  }
}

</mosaic_0001>

<bundles_post_ra>
// kernel: net_forward.8
= control target key start
LH: loop header
LB: loop body
LE: loop exit
PB: predicated region body
PF: predicated region fallthrough
CT: control target
= control target key end

     0   :  { %s872_s18 = smov 0   ;;  %s970_s0 = inlined_call_operand.vmem [shape: f32[128,128], index: 0, kind: input, shape index: {}]   ;;  %s971_s1 = inlined_call_operand.vmem [shape: bf16[128,128], index: 1, kind: input, shape index: {}]   ;;  %s972_s2 = inlined_call_operand.vmem [shape: f32[1,128], index: 2, kind: input, shape index: {}]   ;;  %s973_s3 = inlined_call_operand.vmem [shape: bf16[128,128], index: 3, kind: input, shape index: {}]   ;;  %s974_s4 = inlined_call_operand.vmem [shape: f32[1,128], index: 4, kind: input, shape index: {}]   ;;  %s975_s5 = inlined_call_operand.vmem [shape: f32[128,128], index: 5, kind: output, shape index: {}]  }
   0x1 LB: > { %s661_s19 = sadd.s32 4294967295, %s840_s18   ;;  %p665_p0 = scmp.ge.s32.totalorder %s840_s18, 1  ;;  %s840_s18 = sphi %s872_s18, %s15_s18  }
   0x2   : > { %p188_p1 = scmp.lt.s32.totalorder %s840_s18, 3 }
   0x4   : > { %p189_p2 = pnand %p665_p0, %p188_p1 }
   0x5   : > { %v786_v0 = vld [vmem:[%s971_s1] sm:$0xff] (!%p189_p2)   ;;  %s666_s22 = sshll.u32 (!%p189_p2), %s661_s19, 3  ;;  %v787_v1 = vld [vmem:[%s971_s1 + $0x8] sm:$0xff] (!%p189_p2)   ;;  %v788_v2 = vld [vmem:[%s971_s1 + $0x10] sm:$0xff] (!%p189_p2)  }
   0x6   : > { %192 = sbr.rel (%p189_p2) target bundleno = 516 (0x204), region = 40  ;;  %p217_p3 = scmp.lt.s32.totalorder (!%p189_p2), %s666_s22, 15  ;;  %730 = vmatprep.subr.bf16.mxu0 (!%p189_p2), %v786_v0  ;;  %v789_v3 = vld [vmem:[%s971_s1 + $0x18] sm:$0xff] (!%p189_p2)   ;;  %v790_v7 = vld [vmem:[%s971_s1 + $0x20] sm:$0xff] (!%p189_p2)   ;;  %v795_v9 = vld [vmem:[%s973_s3 + $0x8] sm:$0xff] (!%p189_p2)  }
   0x7   : > { %731 = vmatpush3.bf16.msra.mxu0 (!%p189_p2), %v786_v0  ;;  %v794_v8 = vld [vmem:[%s973_s3] sm:$0xff] (!%p189_p2)   ;;  %v791_v10 = vld [vmem:[%s971_s1 + $0x28] sm:$0xff] (!%p189_p2)   ;;  %v792_v11 = vld [vmem:[%s971_s1 + $0x30] sm:$0xff] (!%p189_p2)  }
   0x8   : > { %732 = vmatprep.subr.bf16.mxu0 (!%p189_p2), %v787_v1  ;;  %754 = vmatprep.subr.bf16.mxu1 (!%p189_p2), %v794_v8  ;;  %v793_v12 = vld [vmem:[%s971_s1 + $0x38] sm:$0xff] (!%p189_p2)   ;;  %v796_v22 = vld [vmem:[%s973_s3 + $0x10] sm:$0xff] (!%p189_p2)   ;;  %v798_v24 = vld [vmem:[%s973_s3 + $0x20] sm:$0xff] (!%p189_p2)  }
   0x9   : > { %755 = vmatpush3.bf16.msra.mxu1 (!%p189_p2), %v794_v8  ;;  %v797_v23 = vld [vmem:[%s973_s3 + $0x18] sm:$0xff] (!%p189_p2)   ;;  %v799_v25 = vld [vmem:[%s973_s3 + $0x28] sm:$0xff] (!%p189_p2)   ;;  %v800_v26 = vld [vmem:[%s973_s3 + $0x30] sm:$0xff] (!%p189_p2)  }
   0xa   : > { %756 = vmatprep.subr.bf16.mxu1 (!%p189_p2), %v795_v9  ;;  %v801_v27 = vld [vmem:[%s973_s3 + $0x38] sm:$0xff] (!%p189_p2)   ;;  %v670_v28 = vld [vmem:[%s972_s2] ss:$0 sm:$0xff] (!%p189_p2) }
   0xb   : > { %733 = vmatpush3.bf16.msra.mxu0 (!%p189_p2), %v787_v1 }
   0xc   : > { %734 = vmatprep.subr.bf16.mxu0 (!%p189_p2), %v788_v2 }
   0xd   : > { %s977_s22 = smov (!%p217_p3, %s666_s22), 15  ;;  %757 = vmatpush3.bf16.msra.mxu1 %v795_v9 }
   0xe   : > { %s667_s27 = sshll.u32 %s977_s22, 3  ;;  %758 = vmatprep.subr.bf16.mxu1 %v796_v22 }
   0xf   : > { %s897_s30 = scalar_lea.vmem %s970_s0, %s667_s27  ;;  %735 = vmatpush3.bf16.msra.mxu0 %v788_v2  ;;  %s957_s16 = scalar_lea.vmem %s975_s5, %s667_s27 }
  0x10   : > { %v229_v4 = vld [vmem:[%s897_s30] sm:$0xff]  ;;  %v230_v5 = vld [vmem:[%s897_s30 + $0x8] sm:$0xff]  ;;  %736 = vmatprep.subr.bf16.mxu0 %v789_v3  ;;  %v231_v13 = vld [vmem:[%s897_s30 + $0x10] sm:$0xff] }
  0x11   : > { %v237_v6 = vpack.c.bf16 %v230_v5, %v229_v4  ;;  %v232_v14 = vld [vmem:[%s897_s30 + $0x18] sm:$0xff]  ;;  %v233_v15 = vld [vmem:[%s897_s30 + $0x20] sm:$0xff]  ;;  %v234_v16 = vld [vmem:[%s897_s30 + $0x28] sm:$0xff]  ;;  %759 = vmatpush3.bf16.msra.mxu1 %v796_v22 }
  0x12   : > { %v238_v17 = vpack.c.bf16 %v232_v14, %v231_v13  ;;  %v239_v18 = vpack.c.bf16 %v234_v16, %v233_v15  ;;  %v235_v19 = vld [vmem:[%s897_s30 + $0x30] sm:$0xff]  ;;  %v236_v20 = vld [vmem:[%s897_s30 + $0x38] sm:$0xff]  ;;  %760 = vmatprep.subr.bf16.mxu1 %v797_v23 }
  0x13   : > { %746 = vmatprep.mubr.bf16.mxu0 %v237_v6  ;;  %737 = vmatpush3.bf16.msra.mxu0 %v789_v3  ;;  %v240_v21 = vpack.c.bf16 %v236_v20, %v235_v19 }
  0x14   : > { %738 = vmatprep.subr.bf16.mxu0 %v790_v7 }
  0x15   : > { %761 = vmatpush3.bf16.msra.mxu1 %v797_v23 }
  0x16   : > { %762 = vmatprep.subr.bf16.mxu1 %v798_v24 }
  0x17   : > { %739 = vmatpush3.bf16.msra.mxu0 %v790_v7 }
  0x18   : > { %740 = vmatprep.subr.bf16.mxu0 %v791_v10 }
  0x19   : > { %763 = vmatpush3.bf16.msra.mxu1 %v798_v24 }
  0x1a   : > { %764 = vmatprep.subr.bf16.mxu1 %v799_v25 }
  0x1b   : > { %741 = vmatpush3.bf16.msra.mxu0 %v791_v10 }
  0x1c   : > { %742 = vmatprep.subr.bf16.mxu0 %v792_v11 }
  0x1d   : > { %765 = vmatpush3.bf16.msra.mxu1 %v799_v25 }
  0x1e   : > { %766 = vmatprep.subr.bf16.mxu1 %v800_v26 }
  0x1f   : > { %743 = vmatpush3.bf16.msra.mxu0 %v792_v11 }
  0x20   : > { %744 = vmatprep.subr.bf16.mxu0 %v793_v12 }
  0x21   : > { %767 = vmatpush3.bf16.msra.mxu1 %v800_v26 }
  0x22   : > { %768 = vmatprep.subr.bf16.mxu1 %v801_v27 }
  0x23   : > { %745 = vmatpush3.bf16.msra.mxu0 %v793_v12 }
  0x25   : > { %769 = vmatpush3.bf16.msra.mxu1 %v801_v27 }
  0x26   : > { %747 = vmatmul.mubr.bf16.vlgmr.msra.gmra.mrb[0].mxu0 %v238_v17  ;;  %v687_v17 = vld [vmem:[%s974_s4] ss:$0 sm:$0xff] }
  0x27   : > { %750 = vmatprep.mubr.bf16.mxu0 %v239_v18 }
  0x2e   : > { %751 = vmatmul.mubr.bf16.gmra.mrb[4].mxu0 %v240_v21 }
  0xf9   : > { %v748_v29 = vpop.f32.mrb[0].mxu0 }
  0xfa   : > { %v355_v30 = vadd.f32 %v748_v29, %v670_v28  ;;  %v346_v31 = vpop.f32.mrb[1].mxu0 }
  0xfb   : > { %v347_v32 = vadd.f32 %v670_v28, %v346_v31  ;;  %v749_v33 = vpop.f32.mrb[2].mxu0 }
  0xfc   : > { %v389_v34 = vmul.f32 1.442695, %v355_v30  ;;  %v358_v35 = vadd.f32 %v749_v33, %v670_v28  ;;  %v349_v36 = vpop.f32.mrb[3].mxu0  ;;  %vm379_vm0 = vcmp.gt.f32.partialorder %v355_v30, 0.0 }
  0xfd   : > { %v385_v37 = vmul.f32 1.442695, %v347_v32  ;;  %v350_v38 = vadd.f32 %v670_v28, %v349_v36  ;;  %vm377_vm2 = vcmp.gt.f32.partialorder %v347_v32, 0.0 }
  0xfe   : > { %802 = vpow2.f32 %v389_v34  ;;  %v391_v39 = vmul.f32 1.442695, %v358_v35  ;;  %vm380_vm1 = vcmp.gt.f32.partialorder %v358_v35, 0.0 }
  0xff   : > { %804 = vpow2.f32 %v385_v37  ;;  %v387_v40 = vmul.f32 1.442695, %v350_v38  ;;  %vm378_vm3 = vcmp.gt.f32.partialorder %v350_v38, 0.0 }
 0x100   : > { %806 = vpow2.f32 %v391_v39 }
 0x101   : > { %808 = vpow2.f32 %v387_v40  ;;  %v752_v41 = vpop.f32.mrb[4].mxu0 }
 0x102   : > { %v371_v42 = vadd.f32 %v752_v41, %v670_v28  ;;  %v362_v43 = vpop.f32.mrb[5].mxu0 }
 0x103   : > { %v363_v44 = vadd.f32 %v670_v28, %v362_v43  ;;  %v753_v45 = vpop.f32.mrb[6].mxu0 }
 0x104   : > { %v397_v46 = vmul.f32 1.442695, %v371_v42  ;;  %v374_v47 = vadd.f32 %v753_v45, %v670_v28  ;;  %v365_v48 = vpop.f32.mrb[7].mxu0  ;;  %vm383_vm4 = vcmp.gt.f32.partialorder %v371_v42, 0.0 }
 0x105   : > { %v393_v49 = vmul.f32 1.442695, %v363_v44  ;;  %v366_v50 = vadd.f32 %v670_v28, %v365_v48  ;;  %vm381_vm6 = vcmp.gt.f32.partialorder %v363_v44, 0.0 }
 0x106   : > { %810 = vpow2.f32 %v397_v46  ;;  %v399_v51 = vmul.f32 1.442695, %v374_v47  ;;  %vm384_vm5 = vcmp.gt.f32.partialorder %v374_v47, 0.0 }
 0x107   : > { %812 = vpow2.f32 %v393_v49  ;;  %v395_v52 = vmul.f32 1.442695, %v366_v50  ;;  %vm382_vm7 = vcmp.gt.f32.partialorder %v366_v50, 0.0 }
 0x108   : > { %v803_v53 = vpop.eup %802  ;;  %814 = vpow2.f32 %v399_v51 }
 0x109   : > { %v805_v54 = vpop.eup %804  ;;  %v681_v55 = vadd.f32 -1.0, %v803_v53  ;;  %816 = vpow2.f32 %v395_v52 }
 0x10a   : > { %v807_v56 = vpop.eup %806  ;;  %v679_v57 = vadd.f32 -1.0, %v805_v54 }
 0x10b   : > { %v809_v58 = vpop.eup %808  ;;  %v682_v59 = vadd.f32 -1.0, %v807_v56  ;;  %v411_v61 = vsel %vm379_vm0, %v355_v30, %v681_v55 }
 0x10c   : > { %v680_v60 = vadd.f32 -1.0, %v809_v58  ;;  %v409_v63 = vsel %vm377_vm2, %v347_v32, %v679_v57 }
 0x10d   : > { %v412_v62 = vsel %vm380_vm1, %v358_v35, %v682_v59 }
 0x10e   : > { %v410_v0 = vsel %vm378_vm3, %v350_v38, %v680_v60  ;;  %v418_v1 = vpack.c.bf16 %v412_v62, %v411_v61 }
 0x10f   : > { %v417_v2 = vpack.c.bf16 %v410_v0, %v409_v63 }
 0x110   : > { %v811_v3 = vpop.eup %810 }
 0x111   : > { %v813_v4 = vpop.eup %812  ;;  %v685_v5 = vadd.f32 -1.0, %v811_v3  ;;  %770 = vmatprep.mubr.bf16.mxu1 %v417_v2 }
 0x112   : > { %v815_v6 = vpop.eup %814  ;;  %v683_v7 = vadd.f32 -1.0, %v813_v4  ;;  %771 = vmatmul.mubr.bf16.vlgmr.msra.gmra.mrb[0].mxu1 %v418_v1 }
 0x113   : > { %v817_v8 = vpop.eup %816  ;;  %v686_v9 = vadd.f32 -1.0, %v815_v6  ;;  %v415_v11 = vsel %vm383_vm4, %v371_v42, %v685_v5 }
 0x114   : > { %v684_v10 = vadd.f32 -1.0, %v817_v8  ;;  %v413_v13 = vsel %vm381_vm6, %v363_v44, %v683_v7 }
 0x115   : > { %v416_v12 = vsel %vm384_vm5, %v374_v47, %v686_v9 }
 0x116   : > { %v414_v14 = vsel %vm382_vm7, %v366_v50, %v684_v10  ;;  %v420_v15 = vpack.c.bf16 %v416_v12, %v415_v11 }
 0x117   : > { %v419_v16 = vpack.c.bf16 %v414_v14, %v413_v13 }
 0x119   : > { %774 = vmatprep.mubr.bf16.mxu1 %v419_v16 }
 0x11a   : > { %775 = vmatmul.mubr.bf16.gmra.mrb[4].mxu1 %v420_v15 }
 0x1e5   : > { %v772_v18 = vpop.f32.mrb[0].mxu1 }
 0x1e6   : > { %v535_v19 = vadd.f32 %v772_v18, %v687_v17  ;;  %v526_v20 = vpop.f32.mrb[1].mxu1 }
 0x1e7   : > { %v527_v21 = vadd.f32 %v687_v17, %v526_v20  ;;  %v773_v22 = vpop.f32.mrb[2].mxu1 }
 0x1e8   : > { %v569_v23 = vmul.f32 1.442695, %v535_v19  ;;  %v538_v24 = vadd.f32 %v773_v22, %v687_v17  ;;  %v529_v25 = vpop.f32.mrb[3].mxu1  ;;  %vm559_vm8 = vcmp.gt.f32.partialorder %v535_v19, 0.0 }
 0x1e9   : > { %v565_v26 = vmul.f32 1.442695, %v527_v21  ;;  %v530_v27 = vadd.f32 %v687_v17, %v529_v25  ;;  %vm557_vm9 = vcmp.gt.f32.partialorder %v527_v21, 0.0 }
 0x1ea   : > { %818 = vpow2.f32 %v569_v23  ;;  %v571_v28 = vmul.f32 1.442695, %v538_v24  ;;  %vm560_vm10 = vcmp.gt.f32.partialorder %v538_v24, 0.0 }
 0x1eb   : > { %820 = vpow2.f32 %v565_v26  ;;  %v567_v29 = vmul.f32 1.442695, %v530_v27  ;;  %vm558_vm11 = vcmp.gt.f32.partialorder %v530_v27, 0.0 }
 0x1ec   : > { %822 = vpow2.f32 %v571_v28 }
 0x1ed   : > { %824 = vpow2.f32 %v567_v29  ;;  %v776_v30 = vpop.f32.mrb[4].mxu1 }
 0x1ee   : > { %v551_v31 = vadd.f32 %v776_v30, %v687_v17  ;;  %v542_v32 = vpop.f32.mrb[5].mxu1 }
 0x1ef   : > { %v543_v33 = vadd.f32 %v687_v17, %v542_v32  ;;  %v777_v34 = vpop.f32.mrb[6].mxu1 }
 0x1f0   : > { %v577_v35 = vmul.f32 1.442695, %v551_v31  ;;  %v554_v36 = vadd.f32 %v777_v34, %v687_v17  ;;  %v545_v37 = vpop.f32.mrb[7].mxu1  ;;  %vm563_vm12 = vcmp.gt.f32.partialorder %v551_v31, 0.0 }
 0x1f1   : > { %v573_v38 = vmul.f32 1.442695, %v543_v33  ;;  %v546_v39 = vadd.f32 %v687_v17, %v545_v37  ;;  %vm561_vm13 = vcmp.gt.f32.partialorder %v543_v33, 0.0 }
 0x1f2   : > { %826 = vpow2.f32 %v577_v35  ;;  %v579_v40 = vmul.f32 1.442695, %v554_v36  ;;  %vm564_vm14 = vcmp.gt.f32.partialorder %v554_v36, 0.0 }
 0x1f3   : > { %828 = vpow2.f32 %v573_v38  ;;  %v575_v41 = vmul.f32 1.442695, %v546_v39  ;;  %vm562_vm15 = vcmp.gt.f32.partialorder %v546_v39, 0.0 }
 0x1f4   : > { %v819_v42 = vpop.eup %818  ;;  %830 = vpow2.f32 %v579_v40 }
 0x1f5   : > { %v821_v43 = vpop.eup %820  ;;  %v698_v44 = vadd.f32 -1.0, %v819_v42  ;;  %832 = vpow2.f32 %v575_v41 }
 0x1f6   : > { %v823_v45 = vpop.eup %822  ;;  %v696_v46 = vadd.f32 -1.0, %v821_v43 }
 0x1f7   : > { %v825_v47 = vpop.eup %824  ;;  %v591_v48 = vsel %vm559_vm8, %v535_v19, %v698_v44  ;;  %v699_v49 = vadd.f32 -1.0, %v823_v45 }
 0x1f8   : > { %599 = vst [vmem:[%s957_s16 + $0x10] sm:$0xff] %v591_v48  ;;  %v589_v50 = vsel %vm557_vm9, %v527_v21, %v696_v46  ;;  %v697_v51 = vadd.f32 -1.0, %v825_v47 }
 0x1f9   : > { %597 = vst [vmem:[%s957_s16] sm:$0xff] %v589_v50  ;;  %v592_v52 = vsel %vm560_vm10, %v538_v24, %v699_v49 }
 0x1fa   : > { %600 = vst [vmem:[%s957_s16 + $0x18] sm:$0xff] %v592_v52  ;;  %v590_v53 = vsel %vm558_vm11, %v530_v27, %v697_v51 }
 0x1fb   : > { %598 = vst [vmem:[%s957_s16 + $0x8] sm:$0xff] %v590_v53 }
 0x1fc   : > { %v827_v54 = vpop.eup %826 }
 0x1fd   : > { %v829_v55 = vpop.eup %828  ;;  %v702_v56 = vadd.f32 -1.0, %v827_v54 }
 0x1fe   : > { %v831_v57 = vpop.eup %830  ;;  %v700_v58 = vadd.f32 -1.0, %v829_v55 }
 0x1ff   : > { %v833_v59 = vpop.eup %832  ;;  %v595_v60 = vsel %vm563_vm12, %v551_v31, %v702_v56  ;;  %v703_v61 = vadd.f32 -1.0, %v831_v57 }
 0x200   : > { %603 = vst [vmem:[%s957_s16 + $0x30] sm:$0xff] %v595_v60  ;;  %v593_v62 = vsel %vm561_vm13, %v543_v33, %v700_v58  ;;  %v701_v63 = vadd.f32 -1.0, %v833_v59 }
 0x201   : > { %601 = vst [vmem:[%s957_s16 + $0x20] sm:$0xff] %v593_v62  ;;  %v596_v0 = vsel %vm564_vm14, %v554_v36, %v703_v61 }
 0x202   : > { %604 = vst [vmem:[%s957_s16 + $0x38] sm:$0xff] %v596_v0  ;;  %v594_v1 = vsel %vm562_vm15, %v546_v39, %v701_v63 }
 0x203   : > { %602 = vst [vmem:[%s957_s16 + $0x28] sm:$0xff] %v594_v1 }
 0x204 PF: > { %s15_s18 = sadd.s32 1, %s840_s18  }
 0x205   : > { %p12_p4 = scmp.ge.s32.totalorder %s15_s18, 4  }
 0x207   :  { %14 = sbr.rel (!%p12_p4) target bundleno = 1 (0x1), region = 70 }

// kernel: net_forward.9
= control target key start
LH: loop header
LB: loop body
LE: loop exit
PB: predicated region body
PF: predicated region fallthrough
CT: control target
= control target key end

     0   :  { %s1328_s30 = smov 0   ;;  %s1330_s10 = smov 0   ;;  %s1528_s0 = inlined_call_operand.vmem [shape: f32[128,128], index: 0, kind: input, shape index: {}]   ;;  %s1529_s1 = inlined_call_operand.vmem [shape: bf16[128,128], index: 1, kind: input, shape index: {}]   ;;  %s1530_s2 = inlined_call_operand.vmem [shape: s32[128,1], index: 2, kind: input, shape index: {}]   ;;  %s1531_s3 = inlined_call_operand.vmem [shape: s32[1,128], index: 3, kind: input, shape index: {}]   ;;  %s1532_s4 = inlined_call_operand.vmem [shape: f32[1,128], index: 4, kind: input, shape index: {}]   ;;  %s1533_s5 = inlined_call_operand.vmem [shape: bf16[128,256], index: 5, kind: input, shape index: {}]   ;;  %s1534_s6 = inlined_call_operand.vmem [shape: f32[1,128], index: 6, kind: input, shape index: {}]   ;;  %s1535_s7 = inlined_call_operand.vmem [shape: f32[128,128], index: 7, kind: output, shape index: {0}]   ;;  %s1536_s8 = inlined_call_operand.vmem [shape: f32[128,128], index: 8, kind: output, shape index: {1}]   ;;  %s1537_s9 = inlined_call_operand.vmem [shape: f32[128,128], index: 9, kind: output, shape index: {2}]  }
   0x1   :  { %s1332_s11 = smov 0  }
   0x2 LB: > { %s32_s12 = sadd.s32 1, %s1271_s10  ;;  %p1118_p0 = scmp.ge.s32.totalorder %s1275_s11, 1  ;;  %s1275_s11 = sphi %s1332_s11, %s20_s11   ;;  %s1271_s10 = sphi %s1330_s10, %s1539_s10   ;;  %s1267_s30 = sphi %s1328_s30, %s1538_s30  }
   0x3   : > { %p34_p1 = scmp.ge.s32.totalorder %s32_s12, 2  ;;  %p345_p2 = scmp.lt.s32.totalorder %s1275_s11, 3 }
   0x5   : > { %s1541_s12 = smov (%p34_p1, %s32_s12), 0  ;;  %p346_p3 = pnand %p1118_p0, %p345_p2 }
   0x6   : > { %v1221_v0 = vld [vmem:[%s1529_s1] sm:$0xff] (!%p346_p3)   ;;  %v1222_v1 = vld [vmem:[%s1529_s1 + $0x8] sm:$0xff] (!%p346_p3)   ;;  %v1277_v2 = vmov (!%p346_p3), 0   ;;  %s1119_s17 = sshll.u32 (!%p346_p3), %s1267_s30, 3  ;;  %v1227_v5 = vld [vmem:[%s1533_s5 + $0x14] ss:$8 sps:$4 sm:$0xff] (!%p346_p3)  }
   0x7   : > { %349 = sbr.rel (%p346_p3) target bundleno = 303 (0x12f), region = 48  ;;  %845 = vmatprep.mubr.bf16.mxu1 (!%p346_p3), %v1277_v2  ;;  %1220 = vset.pattern.permute.xlu1 (!%p346_p3), %v1277_v2  ;;  %v1224_v3 = vld [vmem:[%s1533_s5 + $0x4] ss:$8 sps:$4 sm:$0xff] (!%p346_p3)   ;;  %p411_p4 = scmp.lt.s32.totalorder (!%p346_p3), %s1119_s17, 15  ;;  %v1226_v4 = vld [vmem:[%s1533_s5] ss:$8 sps:$4 sm:$0xff] (!%p346_p3)  }
   0x8   : > { %1170 = vmatprep.subr.bf16.mxu0 (!%p346_p3), %v1221_v0  ;;  %1219 = vset.pattern.permute.xlu0 (!%p346_p3), %v1277_v2  ;;  %v1230_v6 = vld [vmem:[%s1533_s5 + $0x10] ss:$8 sps:$4 sm:$0xff] (!%p346_p3)   ;;  %v1231_v7 = vld [vmem:[%s1533_s5 + $0x24] ss:$8 sps:$4 sm:$0xff] (!%p346_p3)   ;;  %v1233_v9 = vld [vmem:[%s1533_s5 + $0x20] ss:$8 sps:$4 sm:$0xff] (!%p346_p3)  }
   0x9   : > { %1171 = vmatpush3.bf16.xpose.msra.mxu0 (!%p346_p3), %v1221_v0  ;;  %813 = vmatprep.subr.bf16.mxu1 (!%p346_p3), %v1224_v3  ;;  %v1223_v8 = vld [vmem:[%s1529_s1 + $0x10] sm:$0xff] (!%p346_p3)   ;;  %v1238_v12 = vld [vmem:[%s1533_s5 + $0x44] ss:$8 sps:$4 sm:$0xff] (!%p346_p3)   ;;  %v1229_v13 = vld [vmem:[%s1529_s1 + $0x18] sm:$0xff] (!%p346_p3)  }
   0xa   : > { %1172 = vmatprep.subr.bf16.mxu0 (!%p346_p3), %v1222_v1  ;;  %814 = vmatpush1.bf16.msra.mxu1 (!%p346_p3), %v1226_v4  ;;  %v1234_v10 = vld [vmem:[%s1533_s5 + $0x34] ss:$8 sps:$4 sm:$0xff] (!%p346_p3)   ;;  %v1237_v11 = vld [vmem:[%s1533_s5 + $0x30] ss:$8 sps:$4 sm:$0xff] (!%p346_p3)   ;;  %v1240_v14 = vld [vmem:[%s1533_s5 + $0x40] ss:$8 sps:$4 sm:$0xff] (!%p346_p3)  }
   0xb   : > { %815 = vmatprep.subr.bf16.mxu1 (!%p346_p3), %v1227_v5  ;;  %v1241_v18 = vld [vmem:[%s1533_s5 + $0x54] ss:$8 sps:$4 sm:$0xff] (!%p346_p3)   ;;  %v1244_v24 = vld [vmem:[%s1533_s5 + $0x50] ss:$8 sps:$4 sm:$0xff] (!%p346_p3)   ;;  %v1245_v26 = vld [vmem:[%s1533_s5 + $0x64] ss:$8 sps:$4 sm:$0xff] (!%p346_p3)  }
   0xc   : > { %v1236_v28 = vld [vmem:[%s1529_s1 + $0x20] sm:$0xff] (!%p346_p3)   ;;  %v1248_v33 = vld [vmem:[%s1533_s5 + $0x74] ss:$8 sps:$4 sm:$0xff] (!%p346_p3)   ;;  %v1251_v37 = vld [vmem:[%s1533_s5 + $0x70] ss:$8 sps:$4 sm:$0xff] (!%p346_p3)  }
   0xd   : > { %v1247_v31 = vld [vmem:[%s1533_s5 + $0x60] ss:$8 sps:$4 sm:$0xff] (!%p346_p3)   ;;  %v1250_v40 = vld [vmem:[%s1529_s1 + $0x30] sm:$0xff] (!%p346_p3)   ;;  %v1252_v42 = vld [vmem:[%s1529_s1 + $0x38] sm:$0xff] (!%p346_p3)  }
   0xe   : > { %s1543_s17 = smov (!%p411_p4, %s1119_s17), 15  ;;  %816 = vmatpush1.bf16.msra.mxu1 %v1230_v6  ;;  %v1243_v39 = vld [vmem:[%s1529_s1 + $0x28] sm:$0xff]   ;;  %v1155_v56 = vld [vmem:[%s1534_s6] ss:$0 sm:$0xff] }
   0xf   : > { %817 = vmatprep.subr.bf16.mxu1 %v1231_v7  ;;  %s1382_s16 = sshll.u32 %s1543_s17, 3 }
  0x10   : > { %s1391_s22 = scalar_lea.vmem %s1528_s0, %s1382_s16  ;;  %s426_s13 = scalar_lea.vmem %s1530_s2, %s1382_s16 }
  0x11   : > { %1173 = vmatpush3.bf16.xpose.msra.mxu0 %v1222_v1  ;;  %v456_v15 = vld [vmem:[%s1391_s22] sm:$0xff]  ;;  %v457_v16 = vld [vmem:[%s1391_s22 + $0x8] sm:$0xff]  ;;  %v458_v20 = vld [vmem:[%s1391_s22 + $0x10] sm:$0xff]  ;;  %s1460_s23 = scalar_lea.vmem %s1537_s9, %s1382_s16  ;;  %s1468_s25 = scalar_lea.vmem %s1536_s8, %s1382_s16 }
  0x12   : > { %1174 = vmatprep.subr.bf16.mxu0 %v1223_v8  ;;  %818 = vmatpush1.bf16.msra.mxu1 %v1233_v9  ;;  %v597_v17 = vmul.f32 %v456_v15, %v456_v15  ;;  %v464_v19 = vpack.c.bf16 %v457_v16, %v456_v15  ;;  %v599_v21 = vmul.f32 %v458_v20, %v458_v20  ;;  %v459_v23 = vld [vmem:[%s1391_s22 + $0x18] sm:$0xff]  ;;  %v460_v27 = vld [vmem:[%s1391_s22 + $0x20] sm:$0xff]  ;;  %v461_v30 = vld [vmem:[%s1391_s22 + $0x28] sm:$0xff] }
  0x13   : > { %819 = vmatprep.subr.bf16.mxu1 %v1234_v10  ;;  %v598_v22 = vmul.f32 %v457_v16, %v457_v16  ;;  %v600_v25 = vmul.f32 %v459_v23, %v459_v23  ;;  %v601_v29 = vmul.f32 %v460_v27, %v460_v27  ;;  %v602_v32 = vmul.f32 %v461_v30, %v461_v30  ;;  %v462_v34 = vld [vmem:[%s1391_s22 + $0x30] sm:$0xff]  ;;  %v463_v36 = vld [vmem:[%s1391_s22 + $0x38] sm:$0xff]  ;;  %v622_v43 = vld [vmem:[%s426_s13 + $0x8] sm:$0xff] }
  0x14   : > { %605 = vadd.xlane.f32.xlu0 %v597_v17  ;;  %1186 = vmatprep.mubr.bf16.mxu0 %v464_v19  ;;  %v603_v35 = vmul.f32 %v462_v34, %v462_v34  ;;  %v604_v38 = vmul.f32 %v463_v36, %v463_v36  ;;  %v465_v41 = vpack.c.bf16 %v459_v23, %v458_v20  ;;  %v621_v45 = vld [vmem:[%s426_s13] sm:$0xff]  ;;  %v623_v46 = vld [vmem:[%s426_s13 + $0x10] sm:$0xff]  ;;  %v624_v47 = vld [vmem:[%s426_s13 + $0x18] sm:$0xff] }
  0x15   : > { %609 = vadd.xlane.f32.xlu1 %v599_v21  ;;  %v466_v44 = vpack.c.bf16 %v461_v30, %v460_v27  ;;  %v467_v48 = vpack.c.bf16 %v463_v36, %v462_v34  ;;  %v625_v49 = vld [vmem:[%s426_s13 + $0x20] sm:$0xff]  ;;  %v626_v50 = vld [vmem:[%s426_s13 + $0x28] sm:$0xff]  ;;  %v627_v51 = vld [vmem:[%s426_s13 + $0x30] sm:$0xff] }
  0x16   : > { %820 = vmatpush1.bf16.msra.mxu1 %v1237_v11  ;;  %v628_v52 = vld [vmem:[%s426_s13 + $0x38] sm:$0xff]  ;;  %v1138_v30 = vld [vmem:[%s1532_s4] ss:$0 sm:$0xff]  ;;  %s1503_s13 = scalar_lea.vmem %s1535_s7, %s1382_s16 }
  0x17   : > { %821 = vmatprep.subr.bf16.mxu1 %v1238_v12  ;;  %v1137_v34 = vld [vmem:[%s1531_s3] ss:$0 sm:$0xff] }
  0x18   : > { %607 = vadd.xlane.f32.xlu0 %v598_v22 }
  0x19   : > { %1175 = vmatpush3.bf16.xpose.msra.mxu0 %v1223_v8  ;;  %611 = vadd.xlane.f32.xlu1 %v600_v25 }
  0x1a   : > { %1176 = vmatprep.subr.bf16.mxu0 %v1229_v13  ;;  %822 = vmatpush1.bf16.msra.mxu1 %v1240_v14 }
  0x1b   : > { %823 = vmatprep.subr.bf16.mxu1 %v1241_v18 }
  0x1c   : > { %613 = vadd.xlane.f32.xlu0 %v601_v29 }
  0x1d   : > { %615 = vadd.xlane.f32.xlu1 %v602_v32 }
  0x1e   : > { %824 = vmatpush1.bf16.msra.mxu1 %v1244_v24 }
  0x1f   : > { %825 = vmatprep.subr.bf16.mxu1 %v1245_v26 }
  0x20   : > { %617 = vadd.xlane.f32.xlu0 %v603_v35 }
  0x21   : > { %1177 = vmatpush3.bf16.xpose.msra.mxu0 %v1229_v13  ;;  %619 = vadd.xlane.f32.xlu1 %v604_v38 }
  0x22   : > { %1178 = vmatprep.subr.bf16.mxu0 %v1236_v28  ;;  %826 = vmatpush1.bf16.msra.mxu1 %v1247_v31 }
  0x23   : > { %827 = vmatprep.subr.bf16.mxu1 %v1248_v33 }
  0x26   : > { %828 = vmatpush1.bf16.msra.mxu1 %v1251_v37 }
  0x29   : > { %1179 = vmatpush3.bf16.xpose.msra.mxu0 %v1236_v28  ;;  %846 = vmatmul.mubr.bf16.vlgmr.msra.gmra.mrb[0].mxu1 %v464_v19 }
  0x2a   : > { %1180 = vmatprep.subr.bf16.mxu0 %v1243_v39  ;;  %855 = vmatprep.mubr.bf16.mxu1 %v1277_v2 }
  0x31   : > { %1181 = vmatpush3.bf16.xpose.msra.mxu0 %v1243_v39  ;;  %856 = vmatmul.mubr.bf16.gmra.mrb[4].mxu1 %v465_v41 }
  0x32   : > { %1182 = vmatprep.subr.bf16.mxu0 %v1250_v40  ;;  %865 = vmatprep.mubr.bf16.mxu1 %v1277_v2 }
  0x33   : > { %634 = vperm.xlu1 %1220, %v622_v43  }
  0x36   : > { %631 = vperm.xlu0 %1219, %v621_v45  }
  0x37   : > { %637 = vperm.xlu1 %1220, %v623_v46  }
  0x39   : > { %1183 = vmatpush3.bf16.xpose.msra.mxu0 %v1250_v40  ;;  %866 = vmatmul.mubr.bf16.gmra.mrb[8].mxu1 %v466_v44 }
  0x3a   : > { %1184 = vmatprep.subr.bf16.mxu0 %v1252_v42  ;;  %875 = vmatprep.mubr.bf16.mxu1 %v1277_v2 }
  0x3b   : > { %640 = vperm.xlu1 %1220, %v624_v47  }
  0x3f   : > { %643 = vperm.xlu1 %1220, %v625_v49  }
  0x41   : > { %1185 = vmatpush3.bf16.xpose.msra.mxu0 %v1252_v42  ;;  %876 = vmatmul.mubr.bf16.gmra.mrb[12].mxu1 %v467_v48 }
  0x43   : > { %646 = vperm.xlu1 %1220, %v626_v50  }
  0x47   : > { %649 = vperm.xlu1 %1220, %v627_v51  }
  0x48   : > { %1187 = vmatmul.mubr.bf16.vlgmr.msra.gmra.mrb[0].mxu0 %v465_v41 }
  0x49   : > { %1190 = vmatprep.mubr.bf16.mxu0 %v466_v44 }
  0x4b   : > { %652 = vperm.xlu1 %1220, %v628_v52  }
  0x50   : > { %1191 = vmatmul.mubr.bf16.gmra.mrb[4].mxu0 %v467_v48 }
  0xa1   : > { %v606_v1 = vpop.xlane.xlu0 %605 }
  0xa2   : > { %v1447_v53 = vpop.xlane.xlu1 %609 }
  0xa5   : > { %v608_v9 = vpop.xlane.xlu0 %607 }
  0xa6   : > { %v1449_v54 = vpop.xlane.xlu1 %611 }
  0xa9   : > { %v1481_v15 = vpop.xlane.xlu0 %613 }
  0xaa   : > { %v1451_v55 = vpop.xlane.xlu1 %615 }
  0xad   : > { %v618_v20 = vpop.xlane.xlu0 %617 }
  0xae   : > { %v1462_v57 = vpop.xlane.xlu1 %619 }
  0xb2   : > { %v1474_v0 = vpop.permute.xlu1 %634 }
  0xb3   : > { %vm659_vm3 = vcmp.eq.s32.totalorder %v1474_v0, %v1137_v34 }
  0xb5   : > { %v632_v33 = vpop.permute.xlu0 %631 }
  0xb6   : > { %v638_v8 = vpop.permute.xlu1 %637  ;;  %vm658_vm0 = vcmp.eq.s32.totalorder %v632_v33, %v1137_v34 }
  0xb7   : > { %vm660_vm1 = vcmp.eq.s32.totalorder %v638_v8, %v1137_v34 }
  0xba   : > { %v641_v13 = vpop.permute.xlu1 %640 }
  0xbb   : > { %vm661_vm2 = vcmp.eq.s32.totalorder %v641_v13, %v1137_v34 }
  0xbe   : > { %v1486_v18 = vpop.permute.xlu1 %643 }
  0xbf   : > { %vm662_vm5 = vcmp.eq.s32.totalorder %v1486_v18, %v1137_v34 }
  0xc2   : > { %v647_v27 = vpop.permute.xlu1 %646 }
  0xc3   : > { %vm663_vm7 = vcmp.eq.s32.totalorder %v647_v27, %v1137_v34 }
  0xc6   : > { %v650_v44 = vpop.permute.xlu1 %649 }
  0xc7   : > { %vm664_vm4 = vcmp.eq.s32.totalorder %v650_v44, %v1137_v34 }
  0xfc   : > { %v847_v58 = vpop.f32.mrb[0].mxu1 }
  0xfd   : > { %v893_v59 = vadd.f32 %v1155_v56, %v847_v58  ;;  %v849_v60 = vpop.f32.mrb[1].mxu1 }
  0xfe   : > { %909 = vst [vmem:[%s1460_s23] sm:$0xff] %v849_v60  ;;  %v851_v61 = vpop.f32.mrb[2].mxu1 }
  0xff   : > { %901 = vst [vmem:[%s1468_s25] sm:$0xff] %v893_v59  ;;  %v894_v62 = vadd.f32 %v1155_v56, %v851_v61  ;;  %v853_v63 = vpop.f32.mrb[3].mxu1 }
 0x100   : > { %910 = vst [vmem:[%s1460_s23 + $0x8] sm:$0xff] %v853_v63  ;;  %v653_v63 = vpop.permute.xlu1 %652 }
 0x101   : > { %902 = vst [vmem:[%s1468_s25 + $0x8] sm:$0xff] %v894_v62  ;;  %vm665_vm6 = vcmp.eq.s32.totalorder %v653_v63, %v1137_v34 }
 0x104   : > { %v857_v2 = vpop.f32.mrb[4].mxu1 }
 0x105   : > { %v895_v3 = vadd.f32 %v1155_v56, %v857_v2  ;;  %v859_v4 = vpop.f32.mrb[5].mxu1 }
 0x106   : > { %911 = vst [vmem:[%s1460_s23 + $0x10] sm:$0xff] %v859_v4  ;;  %v861_v5 = vpop.f32.mrb[6].mxu1 }
 0x107   : > { %903 = vst [vmem:[%s1468_s25 + $0x10] sm:$0xff] %v895_v3  ;;  %v896_v6 = vadd.f32 %v1155_v56, %v861_v5  ;;  %v863_v7 = vpop.f32.mrb[7].mxu1 }
 0x108   : > { %912 = vst [vmem:[%s1460_s23 + $0x18] sm:$0xff] %v863_v7 }
 0x109   : > { %904 = vst [vmem:[%s1468_s25 + $0x18] sm:$0xff] %v896_v6 }
 0x10c   : > { %v867_v10 = vpop.f32.mrb[8].mxu1 }
 0x10d   : > { %v897_v11 = vadd.f32 %v1155_v56, %v867_v10  ;;  %v869_v12 = vpop.f32.mrb[9].mxu1 }
 0x10e   : > { %913 = vst [vmem:[%s1460_s23 + $0x20] sm:$0xff] %v869_v12  ;;  %v871_v14 = vpop.f32.mrb[10].mxu1 }
 0x10f   : > { %905 = vst [vmem:[%s1468_s25 + $0x20] sm:$0xff] %v897_v11  ;;  %v898_v16 = vadd.f32 %v1155_v56, %v871_v14  ;;  %v873_v17 = vpop.f32.mrb[11].mxu1 }
 0x110   : > { %914 = vst [vmem:[%s1460_s23 + $0x28] sm:$0xff] %v873_v17 }
 0x111   : > { %906 = vst [vmem:[%s1468_s25 + $0x28] sm:$0xff] %v898_v16 }
 0x114   : > { %v877_v19 = vpop.f32.mrb[12].mxu1 }
 0x115   : > { %v899_v21 = vadd.f32 %v1155_v56, %v877_v19  ;;  %v879_v22 = vpop.f32.mrb[13].mxu1 }
 0x116   : > { %915 = vst [vmem:[%s1460_s23 + $0x30] sm:$0xff] %v879_v22  ;;  %v881_v23 = vpop.f32.mrb[14].mxu1 }
 0x117   : > { %907 = vst [vmem:[%s1468_s25 + $0x30] sm:$0xff] %v899_v21  ;;  %v900_v24 = vadd.f32 %v1155_v56, %v881_v23  ;;  %v883_v25 = vpop.f32.mrb[15].mxu1 }
 0x118   : > { %916 = vst [vmem:[%s1460_s23 + $0x38] sm:$0xff] %v883_v25 }
 0x119   : > { %908 = vst [vmem:[%s1468_s25 + $0x38] sm:$0xff] %v900_v24 }
 0x11b   : > { %v1188_v26 = vpop.f32.mrb[0].mxu0 }
 0x11c   : > { %v668_v28 = vmul.f32 2.0, %v1188_v26  ;;  %v566_v29 = vpop.f32.mrb[1].mxu0 }
 0x11d   : > { %v666_v31 = vmul.f32 2.0, %v566_v29  ;;  %v1189_v32 = vpop.f32.mrb[2].mxu0 }
 0x11e   : > { %v676_v35 = vsub.f32 %v668_v28, %v1447_v53  ;;  %v669_v36 = vmul.f32 2.0, %v1189_v32  ;;  %v569_v37 = vpop.f32.mrb[3].mxu0 }
 0x11f   : > { %v674_v38 = vsub.f32 %v666_v31, %v606_v1  ;;  %v667_v39 = vmul.f32 2.0, %v569_v37 }
 0x120   : > { %v691_v40 = vsub.f32 %v676_v35, %v1138_v30  ;;  %v677_v41 = vsub.f32 %v669_v36, %v1449_v54 }
 0x121   : > { %v675_v42 = vsub.f32 %v667_v39, %v608_v9  ;;  %v689_v43 = vsub.f32 %v674_v38, %v1138_v30 }
 0x122   : > { %v699_v45 = vsel %vm660_vm1, %v691_v40, -1e+30  ;;  %v692_v46 = vsub.f32 %v677_v41, %v1138_v30 }
 0x123   : > { %707 = vst [vmem:[%s1503_s13 + $0x10] sm:$0xff] %v699_v45  ;;  %v690_v47 = vsub.f32 %v675_v42, %v1138_v30  ;;  %v697_v48 = vsel %vm658_vm0, %v689_v43, -1e+30  ;;  %v1192_v49 = vpop.f32.mrb[4].mxu0 }
 0x124   : > { %v700_v50 = vsel %vm661_vm2, %v692_v46, -1e+30  ;;  %705 = vst [vmem:[%s1503_s13] sm:$0xff] %v697_v48  ;;  %v672_v51 = vmul.f32 2.0, %v1192_v49  ;;  %v582_v52 = vpop.f32.mrb[5].mxu0 }
 0x125   : > { %708 = vst [vmem:[%s1503_s13 + $0x18] sm:$0xff] %v700_v50  ;;  %v698_v53 = vsel %vm659_vm3, %v690_v47, -1e+30  ;;  %v670_v54 = vmul.f32 2.0, %v582_v52  ;;  %v1193_v56 = vpop.f32.mrb[6].mxu0 }
 0x126   : > { %706 = vst [vmem:[%s1503_s13 + $0x8] sm:$0xff] %v698_v53  ;;  %v680_v58 = vsub.f32 %v672_v51, %v618_v20  ;;  %v673_v59 = vmul.f32 2.0, %v1193_v56  ;;  %v585_v60 = vpop.f32.mrb[7].mxu0 }
 0x127   : > { %v678_v61 = vsub.f32 %v670_v54, %v1481_v15  ;;  %v671_v62 = vmul.f32 2.0, %v585_v60 }
 0x128   : > { %v695_v0 = vsub.f32 %v680_v58, %v1138_v30  ;;  %v681_v1 = vsub.f32 %v673_v59, %v1462_v57 }
 0x129   : > { %v693_v2 = vsub.f32 %v678_v61, %v1138_v30  ;;  %v679_v3 = vsub.f32 %v671_v62, %v1451_v55 }
 0x12a   : > { %v703_v4 = vsel %vm664_vm4, %v695_v0, -1e+30  ;;  %v696_v5 = vsub.f32 %v681_v1, %v1138_v30 }
 0x12b   : > { %711 = vst [vmem:[%s1503_s13 + $0x30] sm:$0xff] %v703_v4  ;;  %v701_v6 = vsel %vm662_vm5, %v693_v2, -1e+30  ;;  %v694_v7 = vsub.f32 %v679_v3, %v1138_v30 }
 0x12c   : > { %709 = vst [vmem:[%s1503_s13 + $0x20] sm:$0xff] %v701_v6  ;;  %v704_v8 = vsel %vm665_vm6, %v696_v5, -1e+30 }
 0x12d   : > { %712 = vst [vmem:[%s1503_s13 + $0x38] sm:$0xff] %v704_v8  ;;  %v702_v9 = vsel %vm663_vm7, %v694_v7, -1e+30 }
 0x12e   : > { %710 = vst [vmem:[%s1503_s13 + $0x28] sm:$0xff] %v702_v9 }
 0x12f PF: > { %s20_s11 = sadd.s32 1, %s1275_s11   ;;  %s1538_s30 = smov %s1271_s10 }
 0x130   : > { %p17_p5 = scmp.ge.s32.totalorder %s20_s11, 4   ;;  %s1539_s10 = smov %s1541_s12 }
 0x132   :  { %19 = sbr.rel (!%p17_p5) target bundleno = 2 (0x2), region = 118 }

// kernel: net_forward.10
= control target key start
LH: loop header
LB: loop body
LE: loop exit
PB: predicated region body
PF: predicated region fallthrough
CT: control target
= control target key end

     0   :  { %s603_s0 = inlined_call_operand.vmem [shape: s32[3072], index: 0, kind: input, shape index: {}]   ;;  %s604_s1 = inlined_call_operand.vmem [shape: f32[128,128], index: 1, kind: input, shape index: {}]   ;;  %s605_s2 = inlined_call_operand.vmem [shape: f32[128,128], index: 2, kind: input, shape index: {}]   ;;  %s606_s3 = inlined_call_operand.vmem [shape: f32[128,128], index: 3, kind: output, shape index: {}]  }
   0x1   :  { %s8_s14 = sshll.u32 %s603_s0, 4  ;;  %s9_s14 = int_to_ptr.vmem [resolvable:$true] %s8_s14 }
   0x2   :  { %s410_s15 = scalar_lea.vmem %s9_s14, 384  ;;  %p415_p1 = scmp.lt.s32.totalorder %s9_s14, %s9_s14 }
   0x3   :  { %p411_p0 = scmp.ne.s32.totalorder %s9_s14, %s410_s15  ;;  %p416_p2 = scmp.lt.s32.totalorder %s410_s15, %s410_s15 }
   0x5   :  { %p417_p3 = por %p416_p2, %p415_p1 }
   0x7   :  { %p418_p4 = pnand %p417_p3, %p411_p0 }
   0x9   :  { %421 = shalt.err (!%p418_p4)  }
   0xa   :  { %s440_s16 = smov [#allocation3]  }
   0xb   :  { %11 = dma.vmem_to_smem %s9_s14, 384, %s440_s16, [#allocation2] }
   0xc   :  { %430 = dma.done.wait [#allocation2], 384 }
   0xd   :  { %431 = vsyncadd [#allocation2], 4294966912 }
   0xe   :  { %13 = sfence }
   0xf   :  { %s464_s17 = smov 0  }
  0x10 LB: > { %s378_s0 = sadd.s32 4294967295, %s434_s17   ;;  %p382_p5 = scmp.ge.s32.totalorder %s434_s17, 1  ;;  %s434_s17 = sphi %s464_s17, %s19_s17  }
  0x11   : > { %p120_p6 = scmp.lt.s32.totalorder %s434_s17, 3 }
  0x13   : > { %p121_p7 = pnand %p382_p5, %p120_p6 }
  0x14   : > { %s383_s18 = sshll.u32 (!%p121_p7), %s378_s0, 3  ;;  %s484_s26 = smov (!%p121_p7), 0  }
  0x15   : > { %124 = sbr.rel (%p121_p7) target bundleno = 109 (0x6d), region = 28  ;;  %p143_p8 = scmp.lt.s32.totalorder (!%p121_p7), %s383_s18, 15 }
  0x1c   : > { %s608_s18 = smov (!%p143_p8, %s383_s18), 15 }
  0x1d   : > { %s384_s19 = sshll.u32 %s608_s18, 3 }
  0x1e   : > { %s477_s22 = scalar_lea.vmem %s604_s1, %s384_s19  ;;  %s482_s25 = scalar_lea.vmem %s606_s3, %s384_s19 }
  0x1f LB: >> { %s387_s27 = sshll.u32 %s378_s0, 6  ;;  %s438_s26 = sphi %s484_s26, %s159_s26  }
  0x20   : >> { %s161_s28 = sadd.s32 %s438_s26, %s387_s27 }
  0x21   : >> { %s492_s29 = smul.u32 24, %s161_s28 }
  0x23   : >> { %s163_s30 = sld [smem:[#allocation3 + %s492_s29]]  ;;  %s166_s4 = sadd.s32 1, %s492_s29 }
  0x24   : >> { %s167_s5 = sld [smem:[#allocation3 + %s166_s4]]  ;;  %s171_s6 = sadd.s32 2, %s492_s29 }
  0x25   : >> { %s172_s7 = sld [smem:[#allocation3 + %s171_s6]]  ;;  %s176_s8 = sadd.s32 3, %s492_s29 }
  0x26   : >> { %s177_s9 = sld [smem:[#allocation3 + %s176_s8]]  ;;  %s181_s10 = sadd.s32 4, %s492_s29 }
  0x27   : >> { %s182_s11 = sld [smem:[#allocation3 + %s181_s10]]  ;;  %s186_s12 = sadd.s32 5, %s492_s29 }
  0x28   : >> { %s187_s13 = sld [smem:[#allocation3 + %s186_s12]]  ;;  %s191_s14 = sadd.s32 6, %s492_s29 }
  0x29   : >> { %s164_s18 = scalar_lea.vmem %s605_s2, %s163_s30  ;;  %s504_s19 = sld [smem:[#allocation3 + %s191_s14]] }
  0x2a   : >> { %v165_v0 = vld [vmem:[%s164_s18] sm:$0x1]  ;;  %s168_s23 = scalar_lea.vmem %s605_s2, %s167_s5  ;;  %s196_s24 = sadd.s32 7, %s492_s29 }
  0x2b   : >> { %v169_v1 = vld [vmem:[%s168_s23] sm:$0x1]  ;;  %s173_s4 = scalar_lea.vmem %s605_s2, %s172_s7  ;;  %s197_s6 = sld [smem:[#allocation3 + %s196_s24]] }
  0x2c   : >> { %v170_v2 = vmax.f32 %v165_v0, %v169_v1  ;;  %v174_v3 = vld [vmem:[%s173_s4] sm:$0x1]  ;;  %s178_s10 = scalar_lea.vmem %s605_s2, %s177_s9  ;;  %s201_s12 = sadd.s32 8, %s492_s29 }
  0x2d   : >> { %v179_v4 = vld [vmem:[%s178_s10] sm:$0x1]  ;;  %s183_s15 = scalar_lea.vmem %s605_s2, %s182_s11  ;;  %s202_s16 = sld [smem:[#allocation3 + %s201_s12]] }
  0x2e   : >> { %v175_v5 = vmax.f32 %v170_v2, %v174_v3  ;;  %s188_s20 = scalar_lea.vmem %s605_s2, %s187_s13  ;;  %s206_s21 = sadd.s32 9, %s492_s29  ;;  %v184_v6 = vld [vmem:[%s183_s15] sm:$0x1] }
  0x2f   : >> { %s193_s9 = scalar_lea.vmem %s605_s2, %s504_s19  ;;  %s207_s27 = sld [smem:[#allocation3 + %s206_s21]]  ;;  %v189_v8 = vld [vmem:[%s188_s20] sm:$0x1] }
  0x30   : >> { %v180_v7 = vmax.f32 %v175_v5, %v179_v4  ;;  %s211_s28 = sadd.s32 10, %s492_s29  ;;  %s216_s4 = sadd.s32 11, %s492_s29  ;;  %v194_v10 = vld [vmem:[%s193_s9] sm:$0x1] }
  0x31   : >> { %s198_s8 = scalar_lea.vmem %s605_s2, %s197_s6  ;;  %s212_s10 = sld [smem:[#allocation3 + %s211_s28]] }
  0x32   : >> { %v185_v9 = vmax.f32 %v180_v7, %v184_v6  ;;  %s217_s13 = sld [smem:[#allocation3 + %s216_s4]]  ;;  %s221_s12 = sadd.s32 12, %s492_s29  ;;  %v199_v12 = vld [vmem:[%s198_s8] sm:$0x1] }
  0x33   : >> { %s203_s19 = scalar_lea.vmem %s605_s2, %s202_s16  ;;  %s222_s15 = sld [smem:[#allocation3 + %s221_s12]] }
  0x34   : >> { %v190_v11 = vmax.f32 %v185_v9, %v189_v8  ;;  %s226_s18 = sadd.s32 13, %s492_s29  ;;  %s231_s7 = sadd.s32 14, %s492_s29  ;;  %v204_v14 = vld [vmem:[%s203_s19] sm:$0x1] }
  0x35   : >> { %s208_s21 = scalar_lea.vmem %s605_s2, %s207_s27  ;;  %s227_s23 = sld [smem:[#allocation3 + %s226_s18]] }
  0x36   : >> { %v195_v13 = vmax.f32 %v190_v11, %v194_v10  ;;  %s236_s24 = sadd.s32 15, %s492_s29  ;;  %s232_s4 = sld [smem:[#allocation3 + %s231_s7]]  ;;  %v209_v16 = vld [vmem:[%s208_s21] sm:$0x1] }
  0x37   : >> { %s213_s16 = scalar_lea.vmem %s605_s2, %s212_s10  ;;  %s241_s11 = sadd.s32 16, %s492_s29 }
  0x38   : >> { %v200_v15 = vmax.f32 %v195_v13, %v199_v12  ;;  %s218_s12 = scalar_lea.vmem %s605_s2, %s217_s13  ;;  %s237_s14 = sld [smem:[#allocation3 + %s236_s24]]  ;;  %v214_v18 = vld [vmem:[%s213_s16] sm:$0x1] }
  0x39   : >> { %s246_s27 = sadd.s32 17, %s492_s29  ;;  %s223_s18 = scalar_lea.vmem %s605_s2, %s222_s15  ;;  %v219_v20 = vld [vmem:[%s218_s12] sm:$0x1] }
  0x3a   : >> { %v205_v17 = vmax.f32 %v200_v15, %v204_v14  ;;  %s242_s20 = sld [smem:[#allocation3 + %s241_s11]]  ;;  %s251_s10 = sadd.s32 18, %s492_s29  ;;  %v224_v22 = vld [vmem:[%s223_s18] sm:$0x1] }
  0x3b   : >> { %s228_s21 = scalar_lea.vmem %s605_s2, %s227_s23  ;;  %s247_s9 = sld [smem:[#allocation3 + %s246_s27]] }
  0x3c   : >> { %v210_v19 = vmax.f32 %v205_v17, %v209_v16  ;;  %s256_s13 = sadd.s32 19, %s492_s29  ;;  %s233_s16 = scalar_lea.vmem %s605_s2, %s232_s4  ;;  %v229_v24 = vld [vmem:[%s228_s21] sm:$0x1] }
  0x3d   : >> { %s252_s30 = sld [smem:[#allocation3 + %s251_s10]]  ;;  %s261_s15 = sadd.s32 20, %s492_s29  ;;  %v234_v26 = vld [vmem:[%s233_s16] sm:$0x1] }
  0x3e   : >> { %v215_v21 = vmax.f32 %v210_v19, %v214_v18  ;;  %s238_s12 = scalar_lea.vmem %s605_s2, %s237_s14  ;;  %s257_s5 = sld [smem:[#allocation3 + %s256_s13]] }
  0x3f   : >> { %s266_s23 = sadd.s32 21, %s492_s29  ;;  %s262_s7 = sld [smem:[#allocation3 + %s261_s15]]  ;;  %v239_v28 = vld [vmem:[%s238_s12] sm:$0x1] }
  0x40   : >> { %v220_v23 = vmax.f32 %v215_v21, %v219_v20  ;;  %s243_s18 = scalar_lea.vmem %s605_s2, %s242_s20  ;;  %s271_s4 = sadd.s32 22, %s492_s29 }
  0x41   : >> { %s248_s21 = scalar_lea.vmem %s605_s2, %s247_s9  ;;  %s267_s24 = sld [smem:[#allocation3 + %s266_s23]]  ;;  %v244_v30 = vld [vmem:[%s243_s18] sm:$0x1] }
  0x42   : >> { %v225_v25 = vmax.f32 %v220_v23, %v224_v22  ;;  %s276_s28 = sadd.s32 23, %s492_s29  ;;  %s272_s11 = sld [smem:[#allocation3 + %s271_s4]]  ;;  %v249_v32 = vld [vmem:[%s248_s21] sm:$0x1] }
  0x43   : >> { %s253_s16 = scalar_lea.vmem %s605_s2, %s252_s30  ;;  %s277_s12 = sld [smem:[#allocation3 + %s276_s28]] }
  0x44   : >> { %v230_v27 = vmax.f32 %v225_v25, %v229_v24  ;;  %s258_s8 = scalar_lea.vmem %s605_s2, %s257_s5  ;;  %v254_v34 = vld [vmem:[%s253_s16] sm:$0x1]  ;;  %s281_s21 = scalar_lea.vmem %s477_s22, %s438_s26 }
  0x45   : >> { %s263_s29 = scalar_lea.vmem %s605_s2, %s262_s7  ;;  %v259_v36 = vld [vmem:[%s258_s8] sm:$0x1] }
  0x46   : >> { %v235_v29 = vmax.f32 %v230_v27, %v234_v26  ;;  %v264_v38 = vld [vmem:[%s263_s29] sm:$0x1] }
  0x47   : >> { %s268_s19 = scalar_lea.vmem %s605_s2, %s267_s24  ;;  %v282_v46 = vld [vmem:[%s281_s21] sm:$0x1]  ;;  %s289_s24 = scalar_lea.vmem %s482_s25, %s438_s26 }
  0x48   : >> { %v240_v31 = vmax.f32 %v235_v29, %v239_v28  ;;  %s273_s5 = scalar_lea.vmem %s605_s2, %s272_s11  ;;  %v269_v40 = vld [vmem:[%s268_s19] sm:$0x1]  ;;  %s159_s26 = sadd.s32 1, %s438_s26  }
  0x49   : >> { %s278_s7 = scalar_lea.vmem %s605_s2, %s277_s12  ;;  %v274_v42 = vld [vmem:[%s273_s5] sm:$0x1]  ;;  %p156_p9 = scmp.ge.s32.totalorder %s159_s26, 64  }
  0x4a   : >> { %v245_v33 = vmax.f32 %v240_v31, %v244_v30  ;;  %v279_v44 = vld [vmem:[%s278_s7] sm:$0x1] }
  0x4c   : >> { %v250_v35 = vmax.f32 %v245_v33, %v249_v32 }
  0x4e   : >> { %v255_v37 = vmax.f32 %v250_v35, %v254_v34 }
  0x50   : >> { %v260_v39 = vmax.f32 %v255_v37, %v259_v36 }
  0x52   : >> { %v265_v41 = vmax.f32 %v260_v39, %v264_v38 }
  0x54   : >> { %v270_v43 = vmax.f32 %v265_v41, %v269_v40 }
  0x56   : >> { %v275_v45 = vmax.f32 %v270_v43, %v274_v42 }
  0x58   : >> { %v280_v47 = vmax.f32 %v275_v45, %v279_v44 }
  0x5a   : >> { %v283_v48 = vadd.f32 %v282_v46, %v280_v47 }
  0x5c   : >> { %v285_v49 = vmul.f32 1.442695, %v283_v48  ;;  %vm284_vm0 = vcmp.gt.f32.partialorder %v283_v48, 0.0 }
  0x5e   : >> { %408 = vpow2.f32 %v285_v49 }
  0x66   : > { %158 = sbr.rel (!%p156_p9) target bundleno = 31 (0x1f), region = 91 }
  0x68   : >> { %v409_v50 = vpop.eup %408 }
  0x69   : >> { %v388_v51 = vadd.f32 -1.0, %v409_v50 }
  0x6b   : >> { %v288_v52 = vsel %vm284_vm0, %v283_v48, %v388_v51 }
  0x6c   : >> { %290 = vst [vmem:[%s289_s24] sm:$0x1] %v288_v52 }
  0x6d PF: > { %s19_s17 = sadd.s32 1, %s434_s17  }
  0x6e   : > { %p16_p10 = scmp.ge.s32.totalorder %s19_s17, 4  }
  0x70   :  { %18 = sbr.rel (!%p16_p10) target bundleno = 16 (0x10), region = 102 }

// kernel: net_forward.15
= control target key start
LH: loop header
LB: loop body
LE: loop exit
PB: predicated region body
PF: predicated region fallthrough
CT: control target
= control target key end

     0   :  { %v798_v3 = vmov 0.0|0.0   ;;  %vm799_vm0 = vmmov 0   ;;  %v800_v6 = vmov 0.0   ;;  %s1065_s0 = inlined_call_operand.vmem [shape: f32[128,128], index: 0, kind: input, shape index: {}]   ;;  %s1066_s1 = inlined_call_operand.vmem [shape: s32[1,128], index: 1, kind: input, shape index: {}]   ;;  %s1067_s2 = inlined_call_operand.vmem [shape: f32[128,64], index: 2, kind: input, shape index: {}]   ;;  %s1068_s3 = inlined_call_operand.vmem [shape: f32[1,64], index: 3, kind: input, shape index: {}]   ;;  %s1069_s4 = inlined_call_operand.vmem [shape: f32[64,32], index: 4, kind: input, shape index: {}]   ;;  %s1070_s5 = inlined_call_operand.vmem [shape: f32[1,32], index: 5, kind: input, shape index: {}]   ;;  %s1071_s6 = inlined_call_operand.vmem [shape: f32[32,32], index: 6, kind: input, shape index: {}]   ;;  %s1072_s7 = inlined_call_operand.vmem [shape: f32[1,32], index: 7, kind: input, shape index: {}]   ;;  %s1073_s8 = inlined_call_operand.vmem [shape: f32[32,8], index: 8, kind: input, shape index: {}]   ;;  %s1074_s9 = inlined_call_operand.vmem [shape: f32[1,8], index: 9, kind: input, shape index: {}]   ;;  %s1075_s10 = inlined_call_operand.hbm [shape: f32[2,8], index: 10, kind: output, shape index: {}]  }
   0x1   :  { %v46_v0 = vld [vmem:[%s1065_s0] sm:$0xff]  ;;  %v47_v1 = vld [vmem:[%s1065_s0 + $0x8] sm:$0xff]  ;;  %v48_v2 = vld [vmem:[%s1065_s0 + $0x10] sm:$0xff]  ;;  %691 = vmatprep.subr.bf16.mxu0 %v798_v3  ;;  %612 = vmatprep.mubr.msk.f32.mxu0 %vm799_vm0, %v800_v6 }
   0x2   :  { %v692_v4 = vpack.c.bf16 %v47_v1, %v46_v0  ;;  %v49_v5 = vld [vmem:[%s1065_s0 + $0x18] sm:$0xff]  ;;  %715 = vmatprep.subr.bf16.mxu1 %v798_v3  ;;  %647 = vmatprep.mubr.msk.f32.mxu1 %vm799_vm0, %v800_v6  ;;  %v50_v8 = vld [vmem:[%s1065_s0 + $0x20] sm:$0xff]  ;;  %v51_v9 = vld [vmem:[%s1065_s0 + $0x28] sm:$0xff] }
   0x3   :  { %v695_v7 = vpack.c.bf16 %v49_v5, %v48_v2  ;;  %v132_v10 = vld [vmem:[%s1067_s2] sm:$0xff]  ;;  %v133_v11 = vld [vmem:[%s1067_s2 + $0x8] sm:$0xff]  ;;  %v134_v12 = vld [vmem:[%s1067_s2 + $0x10] sm:$0xff]  ;;  %v698_v14 = vpack.c.bf16 %v51_v9, %v50_v8 }
   0x4   :  { %693 = vmatpush3.bf16.msra.mxu0 %v692_v4  ;;  %v135_v13 = vld [vmem:[%s1067_s2 + $0x18] sm:$0xff]  ;;  %v716_v15 = vpack.c.bf16 %v133_v11, %v132_v10  ;;  %v52_v16 = vld [vmem:[%s1065_s0 + $0x30] sm:$0xff]  ;;  %v136_v19 = vld [vmem:[%s1067_s2 + $0x20] sm:$0xff] }
   0x5   :  { %694 = vmatprep.subr.bf16.mxu0 %v798_v3  ;;  %v53_v17 = vld [vmem:[%s1065_s0 + $0x38] sm:$0xff]  ;;  %v719_v18 = vpack.c.bf16 %v135_v13, %v134_v12  ;;  %v137_v20 = vld [vmem:[%s1067_s2 + $0x28] sm:$0xff] }
   0x6   :  { %717 = vmatpush3.bf16.msra.mxu1 %v716_v15  ;;  %v701_v21 = vpack.c.bf16 %v53_v17, %v52_v16 }
   0x7   :  { %718 = vmatprep.subr.bf16.mxu1 %v798_v3 }
   0x8   :  { %696 = vmatpush3.bf16.msra.mxu0 %v695_v7 }
   0x9   :  { %697 = vmatprep.subr.bf16.mxu0 %v798_v3 }
   0xc   :  { %699 = vmatpush3.bf16.msra.mxu0 %v698_v14 }
   0xd   :  { %15 = vsyncpa [#allocation3], 0  ;;  %700 = vmatprep.subr.bf16.mxu0 %v798_v3  ;;  %v54_v22 = vld [vmem:[%s1065_s0 + $0x40] sm:$0xff]  ;;  %v55_v23 = vld [vmem:[%s1065_s0 + $0x48] sm:$0xff]  ;;  %720 = vmatpush3.bf16.msra.mxu1 %v719_v18  ;;  %v722_v24 = vpack.c.bf16 %v137_v20, %v136_v19  ;;  %v36_v40 = vlaneseq  ;;  %v801_v53 = vmov 1.0   ;;  %vm245_vm2 = vcmask 523264  }
   0xe   :  { %721 = vmatprep.subr.bf16.mxu1 %v798_v3  ;;  %v138_v25 = vld [vmem:[%s1067_s2 + $0x30] sm:$0xff]  ;;  %v139_v26 = vld [vmem:[%s1067_s2 + $0x38] sm:$0xff]  ;;  %v704_v27 = vpack.c.bf16 %v55_v23, %v54_v22  ;;  %v140_v31 = vld [vmem:[%s1067_s2 + $0x40] sm:$0xff]  ;;  %vm335_vm4 = vcmask 261120   ;;  %vm498_vm7 = vcmask 58368  }
   0xf   :  { %v56_v28 = vld [vmem:[%s1065_s0 + $0x50] sm:$0xff]  ;;  %v57_v29 = vld [vmem:[%s1065_s0 + $0x58] sm:$0xff]  ;;  %v725_v30 = vpack.c.bf16 %v139_v26, %v138_v25  ;;  %v141_v32 = vld [vmem:[%s1067_s2 + $0x48] sm:$0xff]  ;;  %v37_v47 = vshrl.u32 %v36_v40, 7 }
  0x10   :  { %702 = vmatpush3.bf16.msra.mxu0 %v701_v21  ;;  %v707_v33 = vpack.c.bf16 %v57_v29, %v56_v28  ;;  %v58_v34 = vld [vmem:[%s1065_s0 + $0x60] sm:$0xff]  ;;  %v59_v35 = vld [vmem:[%s1065_s0 + $0x68] sm:$0xff]  ;;  %v728_v36 = vpack.c.bf16 %v141_v32, %v140_v31  ;;  %v142_v37 = vld [vmem:[%s1067_s2 + $0x50] sm:$0xff] }
  0x11   :  { %703 = vmatprep.subr.bf16.mxu0 %v798_v3  ;;  %723 = vmatpush3.bf16.msra.mxu1 %v722_v24  ;;  %v143_v38 = vld [vmem:[%s1067_s2 + $0x58] sm:$0xff]  ;;  %v710_v39 = vpack.c.bf16 %v59_v35, %v58_v34  ;;  %v60_v41 = vld [vmem:[%s1065_s0 + $0x70] sm:$0xff]  ;;  %v144_v44 = vld [vmem:[%s1067_s2 + $0x60] sm:$0xff] }
  0x12   :  { %724 = vmatprep.subr.bf16.mxu1 %v798_v3  ;;  %v61_v42 = vld [vmem:[%s1065_s0 + $0x78] sm:$0xff]  ;;  %v731_v43 = vpack.c.bf16 %v143_v38, %v142_v37  ;;  %v145_v45 = vld [vmem:[%s1067_s2 + $0x68] sm:$0xff]  ;;  %v514_v48 = vld [vmem:[%s1066_s1] ss:$0 sm:$0xff] }
  0x13   :  { %v713_v46 = vpack.c.bf16 %v61_v42, %v60_v41  ;;  %v734_v49 = vpack.c.bf16 %v145_v45, %v144_v44  ;;  %v146_v50 = vld [vmem:[%s1067_s2 + $0x70] sm:$0xff]  ;;  %v147_v51 = vld [vmem:[%s1067_s2 + $0x78] sm:$0xff]  ;;  %vm43_vm1 = vcmp.eq.s32.totalorder %v37_v47, %v514_v48  ;;  %v230_v56 = vld [vmem:[%s1069_s4] sm:$0xff] }
  0x14   :  { %705 = vmatpush3.bf16.msra.mxu0 %v704_v27  ;;  %v737_v52 = vpack.c.bf16 %v147_v51, %v146_v50  ;;  %v231_v57 = vld [vmem:[%s1069_s4 + $0x8] sm:$0xff]  ;;  %v232_v59 = vld [vmem:[%s1069_s4 + $0x10] sm:$0xff]  ;;  %v233_v60 = vld [vmem:[%s1069_s4 + $0x18] sm:$0xff] }
  0x15   :  { %706 = vmatprep.subr.bf16.mxu0 %v798_v3  ;;  %726 = vmatpush3.bf16.msra.mxu1 %v725_v30  ;;  %v740_v58 = vpack.c.bf16 %v231_v57, %v230_v56  ;;  %v743_v61 = vpack.c.bf16 %v233_v60, %v232_v59  ;;  %v234_v62 = vld [vmem:[%s1069_s4 + $0x20] sm:$0xff]  ;;  %v235_v63 = vld [vmem:[%s1069_s4 + $0x28] sm:$0xff]  ;;  %v236_v1 = vld [vmem:[%s1069_s4 + $0x30] sm:$0xff] }
  0x16   :  { %727 = vmatprep.subr.bf16.mxu1 %v798_v3  ;;  %v746_v0 = vpack.c.bf16 %v235_v63, %v234_v62  ;;  %v237_v2 = vld [vmem:[%s1069_s4 + $0x38] sm:$0xff]  ;;  %v517_v5 = vld [vmem:[%s1068_s3] ss:$0 sm:$0xff]  ;;  %v325_v15 = vld [vmem:[%s1071_s6 + $0x8] sm:$0xff] }
  0x17   :  { %v749_v4 = vpack.c.bf16 %v237_v2, %v236_v1  ;;  %v324_v14 = vld [vmem:[%s1071_s6] sm:$0xff]  ;;  %v326_v17 = vld [vmem:[%s1071_s6 + $0x10] sm:$0xff]  ;;  %v327_v18 = vld [vmem:[%s1071_s6 + $0x18] sm:$0xff] }
  0x18   :  { %708 = vmatpush3.bf16.msra.mxu0 %v707_v33  ;;  %v752_v16 = vpack.c.bf16 %v325_v15, %v324_v14  ;;  %v755_v19 = vpack.c.bf16 %v327_v18, %v326_v17  ;;  %v519_v20 = vld [vmem:[%s1070_s5] ss:$0 sm:$0xff]  ;;  %v415_v29 = vld [vmem:[%s1073_s8 + $0x8] sm:$0xff]  ;;  %v416_v31 = vld [vmem:[%s1073_s8 + $0x10] sm:$0xff] }
  0x19   :  { %709 = vmatprep.subr.bf16.mxu0 %v798_v3  ;;  %729 = vmatpush3.bf16.msra.mxu1 %v728_v36  ;;  %v414_v28 = vld [vmem:[%s1073_s8] sm:$0xff] }
  0x1a   :  { %730 = vmatprep.subr.bf16.mxu1 %v798_v3  ;;  %v758_v30 = vpack.c.bf16 %v415_v29, %v414_v28  ;;  %v522_v33 = vld [vmem:[%s1072_s7] ss:$0 sm:$0xff] }
  0x1b   :  { %v525_v40 = vld [vmem:[%s1074_s9] ss:$0 sm:$0xff] }
  0x1c   :  { %711 = vmatpush3.bf16.msra.mxu0 %v710_v39 }
  0x1d   :  { %712 = vmatprep.subr.bf16.mxu0 %v798_v3  ;;  %732 = vmatpush3.bf16.msra.mxu1 %v731_v43 }
  0x1e   :  { %733 = vmatprep.subr.bf16.mxu1 %v798_v3 }
  0x20   :  { %714 = vmatpush3.bf16.msra.mxu0 %v713_v46 }
  0x21   :  { %739 = vmatprep.subr.bf16.mxu0 %v798_v3  ;;  %735 = vmatpush3.bf16.msra.mxu1 %v734_v49 }
  0x22   :  { %736 = vmatprep.subr.bf16.mxu1 %v798_v3 }
  0x23   :  { %613 = vmatmul.mubr.msk.f32.vlgmr.msra.gmra.mrb[0].mxu0 %vm43_vm1, %v801_v53 }
  0x24   :  { %666 = vmatprep.mubr.msk.f32.mxu0 %vm799_vm0, %v800_v6  ;;  %741 = vmatpush3.bf16.msra.mxu0 %v740_v58 }
  0x25   :  { %738 = vmatpush3.bf16.msra.mxu1 %v737_v52  ;;  %742 = vmatprep.subr.bf16.mxu0 %v798_v3 }
  0x26   :  { %751 = vmatprep.subr.bf16.mxu1 %v798_v3 }
  0x28   :  { %744 = vmatpush3.bf16.msra.mxu0 %v743_v61 }
  0x29   :  { %745 = vmatprep.subr.bf16.mxu0 %v798_v3 }
  0x2c   :  { %747 = vmatpush3.bf16.msra.mxu0 %v746_v0 }
  0x2d   :  { %748 = vmatprep.subr.bf16.mxu0 %v798_v3 }
  0x30   :  { %750 = vmatpush3.bf16.msra.mxu0 %v749_v4 }
  0xf6   :  { %v128_v54 = vpop.f32.mrb[0].mxu0 }
  0xf7   :  { %v614_v55 = vpop.f32.mrb[1].mxu0  ;;  %648 = vmatmul.mubr.f32.vlgmr.msra.gmra.mrb[0].mxu1 %v128_v54 }
  0xf8   :  { %677 = vmatprep.mubr.msk.f32.mxu1 %vm799_vm0, %v800_v6  ;;  %753 = vmatpush3.bf16.msra.mxu1 %v752_v16 }
  0xf9   :  { %754 = vmatprep.subr.bf16.mxu1 %v798_v3 }
  0xfc   :  { %756 = vmatpush3.bf16.msra.mxu1 %v755_v19 }
  0xfd   :  { %757 = vmatprep.subr.bf16.mxu1 %v798_v3 }
 0x1ca   :  { %v221_v7 = vpop.f32.mrb[0].mxu1 }
 0x1cb   :  { %v222_v8 = vadd.f32 %v517_v5, %v221_v7  ;;  %v649_v9 = vpop.f32.mrb[1].mxu1 }
 0x1cd   :  { %v226_v10 = vmul.f32 1.442695, %v222_v8  ;;  %vm225_vm3 = vcmp.gt.f32.partialorder %v222_v8, 0.0 }
 0x1cf   :  { %768 = vpow2.f32 %v226_v10 }
 0x1d9   :  { %v769_v11 = vpop.eup %768 }
 0x1da   :  { %v518_v12 = vadd.f32 -1.0, %v769_v11 }
 0x1dc   :  { %v229_v13 = vsel %vm225_vm3, %v222_v8, %v518_v12 }
 0x1dd   :  { %667 = vmatmul.mubr.msk.f32.vlgmr.msra.gmra.mrb[2].mxu0 %vm245_vm2, %v229_v13 }
 0x2b0   :  { %v315_v21 = vpop.f32.mrb[2].mxu0 }
 0x2b1   :  { %v316_v22 = vadd.f32 %v519_v20, %v315_v21  ;;  %v668_v23 = vpop.f32.mrb[3].mxu0 }
 0x2b3   :  { %v320_v24 = vmul.f32 1.442695, %v316_v22  ;;  %vm319_vm5 = vcmp.gt.f32.partialorder %v316_v22, 0.0 }
 0x2b5   :  { %770 = vpow2.f32 %v320_v24 }
 0x2bf   :  { %v771_v25 = vpop.eup %770 }
 0x2c0   :  { %v521_v26 = vadd.f32 -1.0, %v771_v25 }
 0x2c2   :  { %v323_v27 = vsel %vm319_vm5, %v316_v22, %v521_v26 }
 0x2c3   :  { %678 = vmatmul.mubr.msk.f32.vlgmr.msra.gmra.mrb[2].mxu1 %vm335_vm4, %v323_v27 }
 0x2c4   :  { %688 = vmatprep.mubr.msk.f32.mxu1 %vm799_vm0, %v800_v6  ;;  %759 = vmatpush3.bf16.msra.mxu1 %v758_v30  ;;  %v417_v6 = vld [vmem:[%s1073_s8 + $0x18] sm:$0xff]  ;;  %s802_s8 = smov [#allocation2]  }
 0x2c5   :  { %760 = vmatprep.subr.bf16.mxu1 %v798_v3  ;;  %v761_v32 = vpack.c.bf16 %v417_v6, %v416_v31  ;;  %s506_s29 = sshll.u32 %s802_s8, 4  ;;  %s507_s29 = int_to_ptr.vmem [resolvable:$true] %s506_s29 }
 0x2c6   :  { %s774_s7 = scalar_lea.vmem %s507_s29, 32  ;;  %p779_p1 = scmp.lt.s32.totalorder %s507_s29, %s507_s29 }
 0x2c7   :  { %p775_p0 = scmp.ne.s32.totalorder %s507_s29, %s774_s7  ;;  %p780_p2 = scmp.lt.s32.totalorder %s774_s7, %s774_s7 }
 0x2c8   :  { %762 = vmatpush3.bf16.msra.mxu1 %v761_v32 }
 0x2c9   :  { %p781_p3 = por %p780_p2, %p779_p1 }
 0x2cb   :  { %p782_p4 = pnand %p781_p3, %p775_p0 }
 0x396   :  { %v405_v34 = vpop.f32.mrb[2].mxu1 }
 0x397   :  { %v406_v35 = vadd.f32 %v522_v33, %v405_v34  ;;  %v679_v36 = vpop.f32.mrb[3].mxu1 }
 0x399   :  { %v410_v37 = vmul.f32 1.442695, %v406_v35  ;;  %vm409_vm6 = vcmp.gt.f32.partialorder %v406_v35, 0.0 }
 0x39b   :  { %772 = vpow2.f32 %v410_v37 }
 0x3a5   :  { %v773_v3 = vpop.eup %772 }
 0x3a6   :  { %v524_v38 = vadd.f32 -1.0, %v773_v3 }
 0x3a8   :  { %v413_v39 = vsel %vm409_vm6, %v406_v35, %v524_v38 }
 0x3a9   :  { %689 = vmatmul.mubr.msk.f32.vlgmr.msra.gmra.mrb[4].mxu1 %vm335_vm4, %v413_v39 }
 0x47c   :  { %v494_v41 = vpop.f32.mrb[4].mxu1 }
 0x47d   :  { %v495_v42 = vadd.f32 %v525_v40, %v494_v41  ;;  %v690_v43 = vpop.f32.mrb[5].mxu1 }
 0x47f   :  { %499 = vst.msk [vmem:[#allocation2] sm:$0x3] %vm498_vm7, %v495_v42 }
 0x480   :  { %785 = shalt.err (!%p782_p4)
}
 0x481   :  { %s786_s12 = scalar_lea.hbm %s1075_s10, 32 }
 0x482   :  { %p787_p5 = scmp.ne.s32.totalorder %s1075_s10, %s786_s12  ;;  %p790_p6 = scmp.lt.u32.totalorder %s786_s12, %s1075_s10 }
 0x484   :  { %p792_p7 = pnand %p790_p6, %p787_p5 }
 0x486   :  { %795 = shalt.err (!%p792_p7)
}
 0x487   :  { %509 = dma.vmem_to_hbm [thread:$0]  %s507_s29, 32, %s1075_s10, [#allocation3]  }
 0x488   :  { %796 = dma.done.wait [#allocation3], 32  }
 0x489   :  { %797 = vsyncadd [#allocation3], 4294967264 }
 0x48a   :  { %513 = vsyncpa [#allocation3], 1 }

</bundles_post_ra>
